<compile_context>
chip_gen: v6e
topology: v6e:2x2x1
jax: 0.10.0
libtpu: 0.0.40
codegen_flags: <defaults>
</compile_context>

<pallas_src>
import functools

import jax
import jax.numpy as jnp
from jax.experimental import pallas as pl
from jax.experimental.pallas import tpu as pltpu


def _round_up(x, m):
    return (x + m - 1) // m * m


def _cross_modal_kernel(t_ref, v_ref, wq_ref, bq_ref, wkv_ref, bkv_ref, o_ref,
                        *, lv_real, compute_dtype):
    tb, lt, dp = t_ref.shape
    _, lvp, _ = v_ref.shape

    # ---- Projections: collapse batch into rows -> one MXU matmul each. ----
    t2 = t_ref[...].reshape(tb * lt, dp)                       # (TB*Lt, Dp)
    v2 = v_ref[...].reshape(tb * lvp, dp)                      # (TB*Lv, Dp)

    # Wq is pre-transposed and pre-scaled by 1/sqrt(D); Wkv is [Wk.T | Wv.T].
    q = (jnp.dot(t2, wq_ref[...], preferred_element_type=jnp.float32)
         + bq_ref[...])                                        # (TB*Lt, Dp) f32
    kv = (jnp.dot(v2, wkv_ref[...], preferred_element_type=jnp.float32)
          + bkv_ref[...])                                      # (TB*Lv, 2Dp) f32

    # Dp is a multiple of 128, so this lane split / reshape is a free view.
    Q = q.reshape(tb, lt, dp).astype(compute_dtype)
    K = kv[:, :dp].reshape(tb, lvp, dp).astype(compute_dtype)
    V = kv[:, dp:].reshape(tb, lvp, dp).astype(compute_dtype)

    # ---- Scaled dot-product attention (scale already folded into Q). ----
    scores = jnp.einsum("bqd,bkd->bqk", Q, K,
                        preferred_element_type=jnp.float32)    # (TB, Lt, Lvp)

    if lv_real < lvp:  # static branch: mask zero-padded key positions
        kmask = jax.lax.broadcasted_iota(jnp.int32, scores.shape, 2) < lv_real
        scores = jnp.where(kmask, scores, jnp.float32(-1e30))

    m = jnp.max(scores, axis=-1, keepdims=True)
    p = jnp.exp(scores - m)
    denom = jnp.sum(p, axis=-1, keepdims=True)
    attn = (p * pl.reciprocal(denom, approx=True)).astype(compute_dtype)

    out = jnp.einsum("bqk,bkd->bqd", attn, V,
                     preferred_element_type=jnp.float32)       # (TB, Lt, Dp)
    o_ref[...] = out.astype(o_ref.dtype)


def _pick_block_b(batch, per_b_bytes, fixed_bytes, budget_bytes, min_steps):
    """Largest divisor of `batch` whose VMEM footprint fits the budget while
    keeping at least `min_steps` grid steps."""
    cap = max(1, batch // min_steps) if batch >= min_steps else batch
    best = 1
    for cand in range(1, cap + 1):
        if batch % cand:
            continue
        if fixed_bytes + cand * per_b_bytes <= budget_bytes:
            best = cand
    return best


def cross_modal_alignment(t_emb, v_emb, params, *, block_b=None,
                          compute_dtype=None):
    """t_emb: (B, Lt, D), v_emb: (B, Lv, D). Returns (B, Lt, D)."""
    B, Lt, D = t_emb.shape
    _, Lv, _ = v_emb.shape
    in_dt = jnp.dtype(t_emb.dtype)
    itemsize = in_dt.itemsize
    cdt = jnp.dtype(compute_dtype) if compute_dtype is not None else in_dt

    # Lane / sublane aligned padded shapes.
    sub = max(8, 32 // itemsize)          # 8 for f32, 16 for bf16
    Dp = _round_up(D, 128)
    Ltp = _round_up(Lt, sub)
    Lvp = _round_up(Lv, 128)

    scale = float(D) ** -0.5

    def pad2(a, rows, cols):
        return jnp.pad(a, ((0, rows - a.shape[0]), (0, cols - a.shape[1])))

    # Weights pre-transposed to (in, out); 1/sqrt(D) folded into Wq/bq; K and
    # V projections fused; everything zero-padded to the lane-aligned Dp
    # (zero pads keep Q.K and the output exact; padded dims are sliced off).
    wq_t = pad2(params["wq"].T * scale, Dp, Dp).astype(in_dt)          # (Dp, Dp)
    bq = jnp.pad(params["bq"] * scale, (0, Dp - D)).reshape(1, Dp)
    bq = bq.astype(jnp.float32)                                        # (1, Dp)
    wkv_t = jnp.concatenate(
        [pad2(params["wk"].T, Dp, Dp), pad2(params["wv"].T, Dp, Dp)],
        axis=1).astype(in_dt)                                          # (Dp, 2Dp)
    bkv = jnp.concatenate(
        [jnp.pad(params["bk"], (0, Dp - D)),
         jnp.pad(params["bv"], (0, Dp - D))]).reshape(1, 2 * Dp)
    bkv = bkv.astype(jnp.float32)                                      # (1, 2Dp)

    t_p = jnp.pad(t_emb, ((0, 0), (0, Ltp - Lt), (0, Dp - D)))
    v_p = jnp.pad(v_emb, ((0, 0), (0, Lvp - Lv), (0, Dp - D)))

    # ---- VMEM-budget-driven batch tile. ----
    f32 = 4
    cbytes = cdt.itemsize
    per_b = (
        2 * (Ltp + Lvp) * Dp * itemsize       # t / v tiles (double-buffered)
        + 2 * Ltp * Dp * itemsize             # out tile (double-buffered)
        + (Ltp * Dp + Lvp * 2 * Dp) * f32     # q, kv projections (f32)
        + (Ltp + 2 * Lvp) * Dp * cbytes       # Q, K, V in compute dtype
        + 3 * Ltp * Lvp * f32                 # scores / p / attn
        + Ltp * Dp * f32                      # f32 attention output
    )
    fixed = 2 * 3 * Dp * Dp * itemsize + 2 * 3 * Dp * f32  # weights+biases (2x worst case)
    vmem_limit = 48 * 1024 * 1024             # under v7x's 64 MiB physical VMEM
    budget = int(0.75 * vmem_limit)           # headroom for compiler scratch

    if block_b is not None:
        tb = block_b
    else:
        min_steps = 2 if B >= 2 else 1        # keep both v7x TensorCores busy
        tb = _pick_block_b(B, per_b, fixed, budget, min_steps)
    assert B % tb == 0, "batch must be divisible by the batch tile"

    cost = pl.CostEstimate(
        flops=2 * B * (Ltp * Dp * Dp + 2 * Lvp * Dp * Dp + 2 * Ltp * Lvp * Dp),
        transcendentals=B * Ltp * Lvp,
        bytes_accessed=(itemsize * B * (2 * Ltp * Dp + Lvp * Dp)   # in + out
                        + itemsize * 3 * Dp * Dp                   # weights
                        + f32 * 3 * Dp),                           # biases
    )

    kernel = functools.partial(_cross_modal_kernel, lv_real=Lv,
                               compute_dtype=cdt)

    def run(weight_mode):
        wkw = {} if weight_mode is None else {"pipeline_mode": weight_mode}
        grid_spec = pltpu.PrefetchScalarGridSpec(
            num_scalar_prefetch=0,
            grid=(B // tb,),
            in_specs=[
                pl.BlockSpec((tb, Ltp, Dp), lambda i: (i, 0, 0)),      # t_emb
                pl.BlockSpec((tb, Lvp, Dp), lambda i: (i, 0, 0)),      # v_emb
                pl.BlockSpec((Dp, Dp), lambda i: (0, 0), **wkw),       # Wq.T*scale
                pl.BlockSpec((1, Dp), lambda i: (0, 0), **wkw),        # bq*scale
                pl.BlockSpec((Dp, 2 * Dp), lambda i: (0, 0), **wkw),   # [Wk.T|Wv.T]
                pl.BlockSpec((1, 2 * Dp), lambda i: (0, 0), **wkw),    # [bk|bv]
            ],
            out_specs=pl.BlockSpec((tb, Ltp, Dp), lambda i: (i, 0, 0)),
        )
        return pl.pallas_call(
            kernel,
            out_shape=jax.ShapeDtypeStruct((B, Ltp, Dp), in_dt),
            grid_spec=grid_spec,
            compiler_params=pltpu.CompilerParams(
                dimension_semantics=("parallel",),
                vmem_limit_bytes=vmem_limit,
            ),
            cost_estimate=cost,
        )(t_p, v_p, wq_t, bq, wkv_t, bkv)

    try:
        out_p = run(pl.Buffered(1))   # single-buffer the grid-invariant weights
    except Exception:                 # pragma: no cover - jax w/o pipeline_mode
        out_p = run(None)

    return out_p[:, :Lt, :D]


def reference(t_emb, v_emb, params):
    D = t_emb.shape[-1]
    Q = t_emb @ params["wq"].T + params["bq"]
    K = v_emb @ params["wk"].T + params["bk"]
    V = v_emb @ params["wv"].T + params["bv"]
    attn = jax.nn.softmax(Q @ jnp.swapaxes(K, -2, -1) * (D ** -0.5), axis=-1)
    return attn @ V


if __name__ == "__main__":
    B, Lt, Lv, D = 2, 8, 8, 32

    key = jax.random.PRNGKey(0)
    kt, kv, k1, k2, k3, k4, k5, k6 = jax.random.split(key, 8)

    t_emb = jax.random.normal(kt, (B, Lt, D), dtype=jnp.float32)
    v_emb = jax.random.normal(kv, (B, Lv, D), dtype=jnp.float32)

    # PyTorch Linear shapes: W (out, in), b (out,)
    bound = 1.0 / (D ** 0.5)
    params = {
        "wq": jax.random.uniform(k1, (D, D), jnp.float32, -bound, bound),
        "bq": jax.random.uniform(k2, (D,), jnp.float32, -bound, bound),
        "wk": jax.random.uniform(k3, (D, D), jnp.float32, -bound, bound),
        "bk": jax.random.uniform(k4, (D,), jnp.float32, -bound, bound),
        "wv": jax.random.uniform(k5, (D, D), jnp.float32, -bound, bound),
        "bv": jax.random.uniform(k6, (D,), jnp.float32, -bound, bound),
    }

    out = jax.block_until_ready(cross_modal_alignment(t_emb, v_emb, params))
    ref = reference(t_emb, v_emb, params)

    assert out.shape == (B, Lt, D)
    # approx=True reciprocal (EUP vrcp) in the softmax -> slightly looser tol.
    err = jnp.max(jnp.abs(out - ref))
    assert jnp.allclose(out, ref, atol=2e-3, rtol=2e-3), f"max err {err}"

    print("KERNEL_OK")
</pallas_src>

<mosaic_0001>
module attributes {stable_mosaic.version = 11 : i64} {
  func.func @_cross_modal_kernel(%arg0: i32, %arg1: memref<1x8x128xf32, #tpu.memory_space<vmem>>, %arg2: memref<1x128x128xf32, #tpu.memory_space<vmem>>, %arg3: memref<128x128xf32, #tpu.memory_space<vmem>>, %arg4: memref<1x128xf32, #tpu.memory_space<vmem>>, %arg5: memref<128x256xf32, #tpu.memory_space<vmem>>, %arg6: memref<1x256xf32, #tpu.memory_space<vmem>>, %arg7: memref<1x8x128xf32, #tpu.memory_space<vmem>>) attributes {dimension_semantics = [#tpu.dimension_semantics<parallel>], iteration_bounds = array<i64: 2>, scalar_prefetch = 0 : i64, scratch_operands = 0 : i64, tpu.core_type = #tpu.core_type<tc>, window_params = [{transform_indices = @transform_0, window_bounds = array<i64: 1, 8, 128>}, {transform_indices = @transform_1, window_bounds = array<i64: 1, 128, 128>}, {pipeline_mode = #tpu.pipeline_mode<synchronous>, transform_indices = @transform_2, window_bounds = array<i64: 128, 128>}, {pipeline_mode = #tpu.pipeline_mode<synchronous>, transform_indices = @transform_3, window_bounds = array<i64: 1, 128>}, {pipeline_mode = #tpu.pipeline_mode<synchronous>, transform_indices = @transform_4, window_bounds = array<i64: 128, 256>}, {pipeline_mode = #tpu.pipeline_mode<synchronous>, transform_indices = @transform_5, window_bounds = array<i64: 1, 256>}, {transform_indices = @transform_6, window_bounds = array<i64: 1, 8, 128>}]} {
    %c0 = arith.constant 0 : index
    %c0_0 = arith.constant 0 : index
    %c0_1 = arith.constant 0 : index
    %0 = vector.load %arg1[%c0, %c0_0, %c0_1] : memref<1x8x128xf32, #tpu.memory_space<vmem>>, vector<1x8x128xf32>
    %1 = vector.shape_cast %0 : vector<1x8x128xf32> to vector<8x128xf32>
    %c0_2 = arith.constant 0 : index
    %c0_3 = arith.constant 0 : index
    %c0_4 = arith.constant 0 : index
    %2 = vector.load %arg2[%c0_2, %c0_3, %c0_4] : memref<1x128x128xf32, #tpu.memory_space<vmem>>, vector<1x128x128xf32>
    %3 = vector.shape_cast %2 : vector<1x128x128xf32> to vector<128x128xf32>
    %c0_5 = arith.constant 0 : index
    %c0_6 = arith.constant 0 : index
    %4 = vector.load %arg3[%c0_5, %c0_6] : memref<128x128xf32, #tpu.memory_space<vmem>>, vector<128x128xf32>
    %cst = arith.constant dense<0.000000e+00> : vector<8x128xf32>
    %5 = tpu.matmul %1, %4, %cst {dimension_numbers = #tpu.dot_dimension_numbers<[1], [0], [0], [1], [0, 0, 1, 1], [], []>} : vector<8x128xf32>, vector<128x128xf32>, vector<8x128xf32> -> vector<8x128xf32>
    %c0_7 = arith.constant 0 : index
    %c0_8 = arith.constant 0 : index
    %6 = vector.load %arg4[%c0_7, %c0_8] : memref<1x128xf32, #tpu.memory_space<vmem>>, vector<1x128xf32>
    %7 = vector.broadcast %6 : vector<1x128xf32> to vector<8x128xf32>
    %8 = arith.addf %5, %7 : vector<8x128xf32>
    %c0_9 = arith.constant 0 : index
    %c0_10 = arith.constant 0 : index
    %9 = vector.load %arg5[%c0_9, %c0_10] : memref<128x256xf32, #tpu.memory_space<vmem>>, vector<128x256xf32>
    %cst_11 = arith.constant dense<0.000000e+00> : vector<128x256xf32>
    %10 = tpu.matmul %3, %9, %cst_11 {dimension_numbers = #tpu.dot_dimension_numbers<[1], [0], [0], [1], [0, 0, 1, 1], [], []>} : vector<128x128xf32>, vector<128x256xf32>, vector<128x256xf32> -> vector<128x256xf32>
    %c0_12 = arith.constant 0 : index
    %c0_13 = arith.constant 0 : index
    %11 = vector.load %arg6[%c0_12, %c0_13] : memref<1x256xf32, #tpu.memory_space<vmem>>, vector<1x256xf32>
    %12 = vector.broadcast %11 : vector<1x256xf32> to vector<128x256xf32>
    %13 = arith.addf %10, %12 : vector<128x256xf32>
    %14 = vector.shape_cast %8 : vector<8x128xf32> to vector<1x8x128xf32>
    %15 = vector.extract_strided_slice %13 {offsets = [0, 0], sizes = [128, 128], strides = [1, 1]} : vector<128x256xf32> to vector<128x128xf32>
    %16 = vector.shape_cast %15 : vector<128x128xf32> to vector<1x128x128xf32>
    %17 = vector.extract_strided_slice %13 {offsets = [0, 128], sizes = [128, 128], strides = [1, 1]} : vector<128x256xf32> to vector<128x128xf32>
    %18 = vector.shape_cast %17 : vector<128x128xf32> to vector<1x128x128xf32>
    "tpu.trace_start"() <{level = 10 : i32, message = "bqd,bkd->bqk"}> : () -> ()
    %cst_14 = arith.constant dense<0.000000e+00> : vector<1x8x128xf32>
    %19 = tpu.matmul %14, %16, %cst_14 {dimension_numbers = #tpu.dot_dimension_numbers<[2], [2], [1], [1], [0, 0, 0, 1, 1, 1], [0], [0]>} : vector<1x8x128xf32>, vector<1x128x128xf32>, vector<1x8x128xf32> -> vector<1x8x128xf32>
    "tpu.trace_stop"() : () -> ()
    %20 = tpu.iota {dimensions = array<i32: 2>} : vector<1x8x128xi32>
    %c8_i32 = arith.constant 8 : i32
    %21 = vector.broadcast %c8_i32 : i32 to vector<1x8x128xi32>
    %22 = arith.cmpi slt, %20, %21 : vector<1x8x128xi32>
    %cst_15 = arith.constant -1.000000e+30 : f32
    %23 = vector.broadcast %cst_15 : f32 to vector<1x8x128xf32>
    %24 = arith.select %22, %19, %23 : vector<1x8x128xi1>, vector<1x8x128xf32>
    %cst_16 = arith.constant dense<0xFF800000> : vector<1x8xf32>
    %25 = vector.multi_reduction <maximumf>, %24, %cst_16 [2] : vector<1x8x128xf32> to vector<1x8xf32>
    %26 = vector.shape_cast %25 : vector<1x8xf32> to vector<1x8x1xf32>
    %27 = vector.broadcast %26 : vector<1x8x1xf32> to vector<1x8x128xf32>
    %28 = arith.subf %24, %27 : vector<1x8x128xf32>
    %29 = math.exp %28 : vector<1x8x128xf32>
    %cst_17 = arith.constant dense<0.000000e+00> : vector<1x8xf32>
    %30 = vector.multi_reduction <add>, %29, %cst_17 [2] : vector<1x8x128xf32> to vector<1x8xf32>
    %31 = vector.shape_cast %30 : vector<1x8xf32> to vector<1x8x1xf32>
    %32 = tpu.reciprocal %31 {approx = true} : vector<1x8x1xf32> -> vector<1x8x1xf32>
    %33 = vector.broadcast %32 : vector<1x8x1xf32> to vector<1x8x128xf32>
    %34 = arith.mulf %29, %33 : vector<1x8x128xf32>
    "tpu.trace_start"() <{level = 10 : i32, message = "bqk,bkd->bqd"}> : () -> ()
    %cst_18 = arith.constant dense<0.000000e+00> : vector<1x8x128xf32>
    %35 = tpu.matmul %34, %18, %cst_18 {dimension_numbers = #tpu.dot_dimension_numbers<[2], [1], [1], [2], [0, 0, 0, 1, 1, 2], [0], [0]>} : vector<1x8x128xf32>, vector<1x128x128xf32>, vector<1x8x128xf32> -> vector<1x8x128xf32>
    "tpu.trace_stop"() : () -> ()
    %c0_19 = arith.constant 0 : index
    %c0_20 = arith.constant 0 : index
    %c0_21 = arith.constant 0 : index
    %36 = vector.load %arg7[%c0_19, %c0_20, %c0_21] : memref<1x8x128xf32, #tpu.memory_space<vmem>>, vector<1x8x128xf32>
    tpu.vector_store %arg7[%c0_19, %c0_20, %c0_21], %35 {strides = array<i32>} : memref<1x8x128xf32, #tpu.memory_space<vmem>>, vector<1x8x128xf32>,
    return
  }
  func.func @transform_0(%arg0: i32) -> (i32, i32, i32) {
    %c0_i32 = arith.constant 0 : i32
    %c0_i32_0 = arith.constant 0 : i32
    %c0_i32_1 = arith.constant 0 : i32
    return %arg0, %c0_i32, %c0_i32_0 : i32, i32, i32
  }
  func.func @transform_1(%arg0: i32) -> (i32, i32, i32) {
    %c0_i32 = arith.constant 0 : i32
    %c0_i32_0 = arith.constant 0 : i32
    %c0_i32_1 = arith.constant 0 : i32
    return %arg0, %c0_i32, %c0_i32_0 : i32, i32, i32
  }
  func.func @transform_2(%arg0: i32) -> (i32, i32) {
    %c0_i32 = arith.constant 0 : i32
    %c0_i32_0 = arith.constant 0 : i32
    %c0_i32_1 = arith.constant 0 : i32
    return %c0_i32, %c0_i32_0 : i32, i32
  }
  func.func @transform_3(%arg0: i32) -> (i32, i32) {
    %c0_i32 = arith.constant 0 : i32
    %c0_i32_0 = arith.constant 0 : i32
    %c0_i32_1 = arith.constant 0 : i32
    return %c0_i32, %c0_i32_0 : i32, i32
  }
  func.func @transform_4(%arg0: i32) -> (i32, i32) {
    %c0_i32 = arith.constant 0 : i32
    %c0_i32_0 = arith.constant 0 : i32
    %c0_i32_1 = arith.constant 0 : i32
    return %c0_i32, %c0_i32_0 : i32, i32
  }
  func.func @transform_5(%arg0: i32) -> (i32, i32) {
    %c0_i32 = arith.constant 0 : i32
    %c0_i32_0 = arith.constant 0 : i32
    %c0_i32_1 = arith.constant 0 : i32
    return %c0_i32, %c0_i32_0 : i32, i32
  }
  func.func @transform_6(%arg0: i32) -> (i32, i32, i32) {
    %c0_i32 = arith.constant 0 : i32
    %c0_i32_0 = arith.constant 0 : i32
    %c0_i32_1 = arith.constant 0 : i32
    return %arg0, %c0_i32, %c0_i32_0 : i32, i32, i32
  }
}

module attributes {stable_mosaic.version = 11 : i64} {
  func.func @_cross_modal_kernel(%arg0: i32, %arg1: memref<1x8x128xf32, #tpu.memory_space<vmem>>, %arg2: memref<1x128x128xf32, #tpu.memory_space<vmem>>, %arg3: memref<128x128xf32, #tpu.memory_space<vmem>>, %arg4: memref<1x128xf32, #tpu.memory_space<vmem>>, %arg5: memref<128x256xf32, #tpu.memory_space<vmem>>, %arg6: memref<1x256xf32, #tpu.memory_space<vmem>>, %arg7: memref<1x8x128xf32, #tpu.memory_space<vmem>>) attributes {dimension_semantics = [#tpu.dimension_semantics<parallel>], iteration_bounds = array<i64: 2>, scalar_prefetch = 0 : i64, scratch_operands = 0 : i64, tpu.core_type = #tpu.core_type<tc>, window_params = [{transform_indices = @transform_0, window_bounds = array<i64: 1, 8, 128>}, {transform_indices = @transform_1, window_bounds = array<i64: 1, 128, 128>}, {pipeline_mode = #tpu.pipeline_mode<synchronous>, transform_indices = @transform_2, window_bounds = array<i64: 128, 128>}, {pipeline_mode = #tpu.pipeline_mode<synchronous>, transform_indices = @transform_3, window_bounds = array<i64: 1, 128>}, {pipeline_mode = #tpu.pipeline_mode<synchronous>, transform_indices = @transform_4, window_bounds = array<i64: 128, 256>}, {pipeline_mode = #tpu.pipeline_mode<synchronous>, transform_indices = @transform_5, window_bounds = array<i64: 1, 256>}, {transform_indices = @transform_6, window_bounds = array<i64: 1, 8, 128>}]} {
    %c0 = arith.constant 0 : index
    %c0_0 = arith.constant 0 : index
    %c0_1 = arith.constant 0 : index
    %0 = vector.load %arg1[%c0, %c0_0, %c0_1] : memref<1x8x128xf32, #tpu.memory_space<vmem>>, vector<1x8x128xf32>
    %1 = vector.shape_cast %0 : vector<1x8x128xf32> to vector<8x128xf32>
    %c0_2 = arith.constant 0 : index
    %c0_3 = arith.constant 0 : index
    %c0_4 = arith.constant 0 : index
    %2 = vector.load %arg2[%c0_2, %c0_3, %c0_4] : memref<1x128x128xf32, #tpu.memory_space<vmem>>, vector<1x128x128xf32>
    %3 = vector.shape_cast %2 : vector<1x128x128xf32> to vector<128x128xf32>
    %c0_5 = arith.constant 0 : index
    %c0_6 = arith.constant 0 : index
    %4 = vector.load %arg3[%c0_5, %c0_6] : memref<128x128xf32, #tpu.memory_space<vmem>>, vector<128x128xf32>
    %cst = arith.constant dense<0.000000e+00> : vector<8x128xf32>
    %5 = tpu.matmul %1, %4, %cst {dimension_numbers = #tpu.dot_dimension_numbers<[1], [0], [0], [1], [0, 0, 1, 1], [], []>} : vector<8x128xf32>, vector<128x128xf32>, vector<8x128xf32> -> vector<8x128xf32>
    %c0_7 = arith.constant 0 : index
    %c0_8 = arith.constant 0 : index
    %6 = vector.load %arg4[%c0_7, %c0_8] : memref<1x128xf32, #tpu.memory_space<vmem>>, vector<1x128xf32>
    %7 = vector.broadcast %6 : vector<1x128xf32> to vector<8x128xf32>
    %8 = arith.addf %5, %7 : vector<8x128xf32>
    %c0_9 = arith.constant 0 : index
    %c0_10 = arith.constant 0 : index
    %9 = vector.load %arg5[%c0_9, %c0_10] : memref<128x256xf32, #tpu.memory_space<vmem>>, vector<128x256xf32>
    %cst_11 = arith.constant dense<0.000000e+00> : vector<128x256xf32>
    %10 = tpu.matmul %3, %9, %cst_11 {dimension_numbers = #tpu.dot_dimension_numbers<[1], [0], [0], [1], [0, 0, 1, 1], [], []>} : vector<128x128xf32>, vector<128x256xf32>, vector<128x256xf32> -> vector<128x256xf32>
    %c0_12 = arith.constant 0 : index
    %c0_13 = arith.constant 0 : index
    %11 = vector.load %arg6[%c0_12, %c0_13] : memref<1x256xf32, #tpu.memory_space<vmem>>, vector<1x256xf32>
    %12 = vector.broadcast %11 : vector<1x256xf32> to vector<128x256xf32>
    %13 = arith.addf %10, %12 : vector<128x256xf32>
    %14 = vector.shape_cast %8 : vector<8x128xf32> to vector<1x8x128xf32>
    %15 = vector.extract_strided_slice %13 {offsets = [0, 0], sizes = [128, 128], strides = [1, 1]} : vector<128x256xf32> to vector<128x128xf32>
    %16 = vector.shape_cast %15 : vector<128x128xf32> to vector<1x128x128xf32>
    %17 = vector.extract_strided_slice %13 {offsets = [0, 128], sizes = [128, 128], strides = [1, 1]} : vector<128x256xf32> to vector<128x128xf32>
    %18 = vector.shape_cast %17 : vector<128x128xf32> to vector<1x128x128xf32>
    "tpu.trace_start"() <{level = 10 : i32, message = "bqd,bkd->bqk"}> : () -> ()
    %cst_14 = arith.constant dense<0.000000e+00> : vector<1x8x128xf32>
    %19 = tpu.matmul %14, %16, %cst_14 {dimension_numbers = #tpu.dot_dimension_numbers<[2], [2], [1], [1], [0, 0, 0, 1, 1, 1], [0], [0]>} : vector<1x8x128xf32>, vector<1x128x128xf32>, vector<1x8x128xf32> -> vector<1x8x128xf32>
    "tpu.trace_stop"() : () -> ()
    %20 = tpu.iota {dimensions = array<i32: 2>} : vector<1x8x128xi32>
    %c8_i32 = arith.constant 8 : i32
    %21 = vector.broadcast %c8_i32 : i32 to vector<1x8x128xi32>
    %22 = arith.cmpi slt, %20, %21 : vector<1x8x128xi32>
    %cst_15 = arith.constant -1.000000e+30 : f32
    %23 = vector.broadcast %cst_15 : f32 to vector<1x8x128xf32>
    %24 = arith.select %22, %19, %23 : vector<1x8x128xi1>, vector<1x8x128xf32>
    %cst_16 = arith.constant dense<0xFF800000> : vector<1x8xf32>
    %25 = vector.multi_reduction <maximumf>, %24, %cst_16 [2] : vector<1x8x128xf32> to vector<1x8xf32>
    %26 = vector.shape_cast %25 : vector<1x8xf32> to vector<1x8x1xf32>
    %27 = vector.broadcast %26 : vector<1x8x1xf32> to vector<1x8x128xf32>
    %28 = arith.subf %24, %27 : vector<1x8x128xf32>
    %29 = math.exp %28 : vector<1x8x128xf32>
    %cst_17 = arith.constant dense<0.000000e+00> : vector<1x8xf32>
    %30 = vector.multi_reduction <add>, %29, %cst_17 [2] : vector<1x8x128xf32> to vector<1x8xf32>
    %31 = vector.shape_cast %30 : vector<1x8xf32> to vector<1x8x1xf32>
    %32 = tpu.reciprocal %31 {approx = true} : vector<1x8x1xf32> -> vector<1x8x1xf32>
    %33 = vector.broadcast %32 : vector<1x8x1xf32> to vector<1x8x128xf32>
    %34 = arith.mulf %29, %33 : vector<1x8x128xf32>
    "tpu.trace_start"() <{level = 10 : i32, message = "bqk,bkd->bqd"}> : () -> ()
    %cst_18 = arith.constant dense<0.000000e+00> : vector<1x8x128xf32>
    %35 = tpu.matmul %34, %18, %cst_18 {dimension_numbers = #tpu.dot_dimension_numbers<[2], [1], [1], [2], [0, 0, 0, 1, 1, 2], [0], [0]>} : vector<1x8x128xf32>, vector<1x128x128xf32>, vector<1x8x128xf32> -> vector<1x8x128xf32>
    "tpu.trace_stop"() : () -> ()
    %c0_19 = arith.constant 0 : index
    %c0_20 = arith.constant 0 : index
    %c0_21 = arith.constant 0 : index
    %36 = vector.load %arg7[%c0_19, %c0_20, %c0_21] : memref<1x8x128xf32, #tpu.memory_space<vmem>>, vector<1x8x128xf32>
    tpu.vector_store %arg7[%c0_19, %c0_20, %c0_21], %35 {strides = array<i32>} : memref<1x8x128xf32, #tpu.memory_space<vmem>>, vector<1x8x128xf32>,
    return
  }
  func.func @transform_0(%arg0: i32) -> (i32, i32, i32) {
    %c0_i32 = arith.constant 0 : i32
    %c0_i32_0 = arith.constant 0 : i32
    %c0_i32_1 = arith.constant 0 : i32
    return %arg0, %c0_i32, %c0_i32_0 : i32, i32, i32
  }
  func.func @transform_1(%arg0: i32) -> (i32, i32, i32) {
    %c0_i32 = arith.constant 0 : i32
    %c0_i32_0 = arith.constant 0 : i32
    %c0_i32_1 = arith.constant 0 : i32
    return %arg0, %c0_i32, %c0_i32_0 : i32, i32, i32
  }
  func.func @transform_2(%arg0: i32) -> (i32, i32) {
    %c0_i32 = arith.constant 0 : i32
    %c0_i32_0 = arith.constant 0 : i32
    %c0_i32_1 = arith.constant 0 : i32
    return %c0_i32, %c0_i32_0 : i32, i32
  }
  func.func @transform_3(%arg0: i32) -> (i32, i32) {
    %c0_i32 = arith.constant 0 : i32
    %c0_i32_0 = arith.constant 0 : i32
    %c0_i32_1 = arith.constant 0 : i32
    return %c0_i32, %c0_i32_0 : i32, i32
  }
  func.func @transform_4(%arg0: i32) -> (i32, i32) {
    %c0_i32 = arith.constant 0 : i32
    %c0_i32_0 = arith.constant 0 : i32
    %c0_i32_1 = arith.constant 0 : i32
    return %c0_i32, %c0_i32_0 : i32, i32
  }
  func.func @transform_5(%arg0: i32) -> (i32, i32) {
    %c0_i32 = arith.constant 0 : i32
    %c0_i32_0 = arith.constant 0 : i32
    %c0_i32_1 = arith.constant 0 : i32
    return %c0_i32, %c0_i32_0 : i32, i32
  }
  func.func @transform_6(%arg0: i32) -> (i32, i32, i32) {
    %c0_i32 = arith.constant 0 : i32
    %c0_i32_0 = arith.constant 0 : i32
    %c0_i32_1 = arith.constant 0 : i32
    return %arg0, %c0_i32, %c0_i32_0 : i32, i32, i32
  }
}

</mosaic_0001>

<bundles_post_ra>
// kernel: tpu_custom_call.1
= control target key start
LH: loop header
LB: loop body
LE: loop exit
PB: predicated region body
PF: predicated region fallthrough
CT: control target
= control target key end

     0   :  { %s1861_s0 = inlined_call_operand.hbm [shape: f32[2,8,128], index: 0, kind: input, shape index: {}]   ;;  %s1862_s1 = inlined_call_operand.hbm [shape: f32[2,128,128], index: 1, kind: input, shape index: {}]   ;;  %s1863_s2 = inlined_call_operand.hbm [shape: f32[128,128], index: 2, kind: input, shape index: {}]   ;;  %s1864_s3 = inlined_call_operand.vmem [shape: f32[1,128], index: 3, kind: input, shape index: {}]   ;;  %s1865_s4 = inlined_call_operand.hbm [shape: f32[128,256], index: 4, kind: input, shape index: {}]   ;;  %s1866_s5 = inlined_call_operand.vmem [shape: f32[1,256], index: 5, kind: input, shape index: {}]   ;;  %s1867_s6 = inlined_call_operand.hbm [shape: f32[2,8,128], index: 6, kind: output, shape index: {}]  }
   0x1   :  { %1873 = sst [smem:[#allocation16_spill]] %s1861_s0 }
   0x2   :  { %1874 = sst [smem:[#allocation17_spill]] %s1863_s2 }
   0x3   :  { %11 = vsyncpa [#allocation3], 0 }
   0x4   :  { %13 = vsyncpa [#allocation3 + $0x1], 0 }
   0x5   :  { %14 = vsyncpa [#allocation6], 0 }
   0x6   :  { %16 = vsyncpa [#allocation6 + $0x1], 0 }
   0x7   :  { %17 = vsyncpa [#allocation9], 0 }
   0x8   :  { %18 = vsyncpa [#allocation4], 0 }
   0x9   :  { %20 = vsyncpa [#allocation4 + $0x1], 0  ;;  %s1423_s21 = smov 0   ;;  %s1425_s22 = smov 0  }
   0xa   :  { %s1427_s23 = smov 0   ;;  %s1429_s24 = smov 0  }
   0xb LB: > { %s1444_s25 = sadd.s32 4294967295, %s1375_s24   ;;  %s931_s26 = sadd.s32 4294967294, %s1375_s24   ;;  %s1375_s24 = sphi %s1429_s24, %s1898_s24   ;;  %s1371_s23 = sphi %s1427_s23, %s1897_s23   ;;  %s1367_s22 = sphi %s1425_s22, %s1896_s22   ;;  %s1363_s21 = sphi %s1423_s21, %s1895_s21  }
   0xc   : > { %p46_p0 = scmp.ne.s32.totalorder %s1367_s22, %s1363_s21  ;;  %p1870_p1 = scmp.eq.s32.totalorder %s1444_s25, 0 }
   0xd   : > { %p180_p2 = scmp.eq.s32.totalorder %s1444_s25, 1  ;;  %p186_p3 = scmp.eq.s32.totalorder %s931_s26, 1 }
   0xe   : > { %p1453_p4 = por %p1870_p1, %p46_p0  ;;  %p932_p5 = scmp.ge.s32.totalorder %s1375_s24, 1 }
   0xf   : > { %p1458_p6 = por %p186_p3, %p46_p0  ;;  %p193_p7 = scmp.lt.s32.totalorder %s1375_s24, 3 }
  0x10   : > { %s1875_s27 = scalar_select %p1453_p4, 1, 0 }
  0x11   : > { %s1876_s28 = scalar_select %p1458_p6, 1, 0 }
  0x12   : > { %p1463_p8 = pnand %p932_p5, %p193_p7  ;;  %s1377_s30 = smov [#allocation7]  }
  0x13   : > { %s205_s7 = sshll.u32 %s1377_s30, 4  ;;  %s1378_s9 = smov [#allocation8]   ;;  %s206_s7 = int_to_ptr.vmem [resolvable:$true] %s205_s7 }
  0x14   : > { %p1123_p9 = pneg %p1463_p8  ;;  %s221_s10 = sshll.u32 %s1378_s9, 4  ;;  %s222_s10 = int_to_ptr.vmem [resolvable:$true] %s221_s10 }
  0x15   : > { %s1202_s11 = scalar_lea.vmem %s206_s7, 2048  ;;  %p1210_p5 = scmp.lt.s32.totalorder %s206_s7, %s206_s7 }
  0x16   : > { %p1472_p11 = pnand %p1123_p9, %p1870_p1  ;;  %p1203_p13 = scmp.ne.s32.totalorder %s206_s7, %s1202_s11 }
  0x17   : > { %p1211_p7 = scmp.lt.s32.totalorder %s1202_s11, %s1202_s11 }
  0x18   : > { %p1193_p12 = pneg %p1472_p11 }
  0x19   : > { %p1212_p10 = por %p1211_p7, %p1210_p5 }
  0x1a   : > { %p1205_p0 = pnand %p1203_p13, %p1193_p12 }
  0x1c   : > { %p1206_p3 = pneg %p1205_p0 }
  0x1e   : > { %p1213_p9 = pnand %p1212_p10, %p1206_p3 }
  0x20   : > { %1216 = shalt.err (!%p1213_p9)
}
  0x21   : > { %s1868_s12 = smov 128   ;;  %s1869_s13 = smov 8  }
  0x22   : > { %s1879_s2 = sld [smem:[#allocation17_spill]]  ;;  %s1228_s16 = scalar_lea.vmem %s222_s10, 4096 }
  0x23   : > { %p1229_p13 = scmp.ne.s32.totalorder %s222_s10, %s1228_s16  ;;  %p1236_p10 = scmp.lt.s32.totalorder %s222_s10, %s222_s10 }
  0x24   : > { %p1237_p3 = scmp.lt.s32.totalorder %s1228_s16, %s1228_s16 }
  0x25   : > { %p1231_p0 = pnand %p1229_p13, %p1193_p12 }
  0x26   : > { %p1238_p7 = por %p1237_p3, %p1236_p10 }
  0x27   : > { %p1232_p5 = pneg %p1231_p0 }
  0x28   : > { %1126 = dma.hbm_to_vmem [thread:$0]  (!%p1472_p11), %s1879_s2, 2048, %s206_s7, [#allocation6], %s1868_s12, %s1868_s12, %s1869_s13  }
  0x29   : > { %p1239_p9 = pnand %p1238_p7, %p1232_p5 }
  0x2b   : > { %1242 = shalt.err (!%p1239_p9)
}
  0x2c   : > { %s1381_s17 = smov 256   ;;  %s1382_s18 = smov 16  }
  0x2d   : > { %1129 = dma.hbm_to_vmem [thread:$0]  (!%p1472_p11), %s1865_s4, 4096, %s222_s10, [#allocation9], %s1381_s17, %s1381_s17, %s1382_s18  }
  0x2e   : > { %s1498_s26 = sadd.s32 1, %s1375_s24   ;;  %s33_s7 = sadd.s32 1, %s1371_s23 }
  0x2f   : > { %s30_s30 = ssub.s32 %s1375_s24, %s1498_s26  ;;  %p40_p13 = scmp.ne.s32.totalorder %s1371_s23, %s1367_s22 }
  0x30   : > { %p31_p12 = scmp.eq.s32.totalorder %s30_s30, 0  ;;  %p41_p0 = scmp.eq.s32.totalorder %s1375_s24, 0 }
  0x31   : > { %p1511_p10 = por %p180_p2, %p40_p13  ;;  %p1143_p3 = scmp.lt.s32.totalorder %s1375_s24, 2 }
  0x32   : > { %s1507_s9 = scalar_select %p31_p12, %s1371_s23, %s33_s7  }
  0x33   : > { %p42_p5 = por %p41_p0, %p40_p13  ;;  %s1517_s8 = sand.u32 1, %s1371_s23  }
  0x34   : > { %s1880_s11 = scalar_select %p1511_p10, 1, 0 }
  0x35   : > { %s936_s10 = sshll.u32 %s1517_s8, 3  ;;  %s937_s14 = sshll.u32 %s1375_s24, 7 }
  0x36   : > { %s1881_s0 = sld [smem:[#allocation16_spill]]  ;;  %s242_s18 = scalar_lea.vmem [#allocation2], %s936_s10 }
  0x37   : > { %s249_s19 = sshll.u32 %s242_s18, 4  ;;  %p1528_p2 = pnand %p1143_p3, %p42_p5  ;;  %s1526_s19 = int_to_ptr.vmem [resolvable:$true] %s249_s19 }
  0x38   : > { %s239_s12 = scalar_lea.sflag [#allocation3], %s1517_s8 }
  0x39   : > { %p1245_p7 = pneg %p1528_p2 }
  0x3c   : > { %s1524_s17 = scalar_lea.hbm %s1881_s0, %s937_s14  ;;  %s1248_s15 = scalar_lea.hbm %s1881_s0, 256 }
  0x3d   : > { %s1243_s13 = scalar_lea.hbm %s1524_s17, 128  ;;  %p1249_p13 = scmp.lt.s32.totalorder %s1524_s17, %s1881_s0 }
  0x3e   : > { %p1244_p11 = scmp.ne.s32.totalorder %s1524_s17, %s1243_s13  ;;  %p1250_p0 = scmp.lt.s32.totalorder %s1248_s15, %s1243_s13 }
  0x40   : > { %p1246_p9 = pnand %p1245_p7, %p1244_p11  ;;  %p1251_p5 = por %p1250_p0, %p1249_p13 }
  0x42   : > { %p1247_p12 = pneg %p1246_p9 }
  0x44   : > { %p1252_p3 = pnand %p1251_p5, %p1247_p12 }
  0x46   : > { %1255 = shalt.err (!%p1252_p3)
}
  0x47   : > { %s1256_s7 = scalar_lea.vmem %s1526_s19, 128  ;;  %s1383_s10 = smov [#allocation2]  }
  0x48   : > { %p1257_p1 = scmp.ne.s32.totalorder %s1526_s19, %s1256_s7  ;;  %s1261_s14 = sshll.u32 %s1383_s10, 4  ;;  %s1262_s14 = int_to_ptr.vmem [resolvable:$false] %s1261_s14 }
  0x49   : > { %s1263_s30 = scalar_lea.vmem %s1262_s14, 256  ;;  %p1264_p6 = scmp.lt.s32.totalorder %s1526_s19, %s1262_s14 }
  0x4a   : > { %p1259_p11 = pnand %p1257_p1, %p1245_p7  ;;  %p1265_p10 = scmp.lt.s32.totalorder %s1263_s30, %s1256_s7 }
  0x4c   : > { %p1260_p9 = pneg %p1259_p11  ;;  %p1266_p4 = por %p1265_p10, %p1264_p6 }
  0x4e   : > { %p1267_p13 = pnand %p1266_p4, %p1260_p9 }
  0x50   : > { %1270 = shalt.err (!%p1267_p13)
}
  0x51   : > { %1133 = dma.hbm_to_vmem [thread:$0]  (!%p1528_p2), %s1524_s17, 128, %s1526_s19, %s239_s12  }
  0x52   : > { %s1883_s13 = sshll.u32 %s1517_s8, 7  ;;  %s952_s18 = sshll.u32 %s1375_s24, 11 }
  0x53   : > { %s260_s15 = scalar_lea.vmem [#allocation5], %s1883_s13  ;;  %s1567_s7 = scalar_lea.hbm %s1862_s1, %s952_s18 }
  0x54   : > { %s267_s16 = sshll.u32 %s260_s15, 4  ;;  %s1884_s14 = sand.u32 1, %s1375_s24   ;;  %s1561_s16 = int_to_ptr.vmem [resolvable:$true] %s267_s16 }
  0x55   : > { %s257_s0 = scalar_lea.sflag [#allocation6], %s1884_s14  ;;  %s1271_s2 = scalar_lea.hbm %s1567_s7, 2048 }
  0x56   : > { %p1272_p1 = scmp.ne.s32.totalorder %s1567_s7, %s1271_s2  ;;  %s1276_s17 = scalar_lea.hbm %s1862_s1, 4096 }
  0x57   : > { %p1277_p10 = scmp.lt.s32.totalorder %s1567_s7, %s1862_s1  ;;  %p1278_p12 = scmp.lt.s32.totalorder %s1276_s17, %s1271_s2 }
  0x58   : > { %p1274_p4 = pnand %p1272_p1, %p1245_p7 }
  0x59   : > { %p1279_p0 = por %p1278_p12, %p1277_p10 }
  0x5a   : > { %p1275_p6 = pneg %p1274_p4 }
  0x5c   : > { %p1280_p5 = pnand %p1279_p0, %p1275_p6 }
  0x5e   : > { %1283 = shalt.err (!%p1280_p5)
}
  0x5f   : > { %s1284_s15 = scalar_lea.vmem %s1561_s16, 2048  ;;  %s1384_s18 = smov [#allocation5]  }
  0x60   : > { %p1285_p3 = scmp.ne.s32.totalorder %s1561_s16, %s1284_s15  ;;  %s1289_s10 = sshll.u32 %s1384_s18, 4  ;;  %s1290_s10 = int_to_ptr.vmem [resolvable:$false] %s1289_s10 }
  0x61   : > { %s1291_s30 = scalar_lea.vmem %s1290_s10, 4096  ;;  %p1292_p13 = scmp.lt.s32.totalorder %s1561_s16, %s1290_s10 }
  0x62   : > { %p1287_p11 = pnand %p1285_p3, %p1245_p7  ;;  %p1293_p1 = scmp.lt.s32.totalorder %s1291_s30, %s1284_s15 }
  0x64   : > { %p1288_p9 = pneg %p1287_p11  ;;  %p1294_p4 = por %p1293_p1, %p1292_p13 }
  0x66   : > { %p1295_p10 = pnand %p1294_p4, %p1288_p9 }
  0x68   : > { %1298 = shalt.err (!%p1295_p10)
}
  0x69   : > { %s1885_s2 = smov 8   ;;  %s1886_s14 = smov 128  }
  0x6a   : > { %1136 = dma.hbm_to_vmem [thread:$0]  (!%p1528_p2), %s1567_s7, 2048, %s1561_s16, %s257_s0, %s1886_s14, %s1886_s14, %s1885_s2  }
  0x6b   : > { %279 = sbr.rel (%p1463_p8) target bundleno = 1186 (0x4a2), region = 44  ;;  %s1599_s12 = sand.u32 (!%p1463_p8), 1, %s1367_s22  }
  0x6c   : > { %s942_s8 = sshll.u32 (!%p1463_p8), %s1599_s12, 3  ;;  %s282_s17 = scalar_lea.sflag (!%p1463_p8), [#allocation3], %s1599_s12 }
  0x6d   : > { %s1605_s20 = scalar_lea.vmem (!%p1463_p8), [#allocation2], %s942_s8  ;;  %p1887_p7 = scmp.ne.s32.totalorder (!%p1463_p8), %s1875_s27, 0 }
  0x70   : > { %1342 = dma.done.wait (%p1887_p7), %s282_s17, 128  }
  0x71   : > { %1344 = vsyncadd (%p1887_p7), %s282_s17, 4294967168  ;;  %s290_s0 = sand.u32 1, %s1444_s25   ;;  %s943_s29 = sshll.u32 %s1599_s12, 7 }
  0x72   : > { %s291_s16 = scalar_lea.sflag [#allocation6], %s290_s0  ;;  %s1613_s7 = scalar_lea.vmem [#allocation5], %s943_s29 }
  0x73   : > { %1346 = dma.done.wait (%p1887_p7), %s291_s16, 2048  }
  0x74   : > { %1348 = vsyncadd (%p1887_p7), %s291_s16, 4294965248  ;;  %p1888_p8 = scmp.eq.s32.totalorder %s1444_s25, 0 }
  0x76   : > { %1350 = dma.done.wait (%p1888_p8), [#allocation6], 2048   ;;  %p1889_p2 = pmov %p1888_p8 }
  0x78   : > { %1352 = vsyncadd (%p1889_p2), [#allocation6], 4294965248  ;;  %p1890_p6 = pmov %p1889_p2 }
  0x79   : > { %p1891_p12 = pmov %p1889_p2 }
  0x7a   : > { %1354 = dma.done.wait (%p1890_p6), [#allocation9], 4096  }
  0x7b   : > { %1356 = vsyncadd (%p1891_p12), [#allocation9], 4294963200  ;;  %v1385_v0 = vmov 0.0   ;;  %vm1386_vm0 = vmmov 0   ;;  %v477_v1 = vld [vmem:[#allocation8 + $0xf8] sm:$0xff]  ;;  %v476_v2 = vld [vmem:[#allocation8 + $0xf0] sm:$0xff] }
  0x7c   : > { %554 = vmatprep.mubr.f32.mxu1 %v1385_v0  ;;  %1004 = vmatprep.subr.mxu0 %v1385_v0  ;;  %v475_v3 = vld [vmem:[#allocation8 + $0xe8] sm:$0xff]  ;;  %v474_v4 = vld [vmem:[#allocation8 + $0xe0] sm:$0xff]  ;;  %v473_v5 = vld [vmem:[#allocation8 + $0xd8] sm:$0xff]  ;;  %s335_s18 = scalar_lea.vmem [#allocation10], %s942_s8  ;;  %s949_s30 = sshll.u32 %s1444_s25, 7 }
  0x7d   : > { %1036 = vmatprep.mubr.msk.f32.mxu0 %vm1386_vm0, %v1385_v0  ;;  %490 = vmatprep.subr.mxu1 %v477_v1  ;;  %v472_v6 = vld [vmem:[#allocation8 + $0xd0] sm:$0xff]  ;;  %v471_v7 = vld [vmem:[#allocation8 + $0xc8] sm:$0xff]  ;;  %v470_v8 = vld [vmem:[#allocation8 + $0xc0] sm:$0xff]  ;;  %s819_s10 = sshll.u32 %s335_s18, 4  ;;  %s1820_s17 = scalar_lea.hbm %s1867_s6, %s949_s30  ;;  %s1815_s10 = int_to_ptr.vmem [resolvable:$true] %s819_s10 }
  0x7e   : > { %491 = vmatpush1.msra.mxu1 %v476_v2  ;;  %v469_v9 = vld [vmem:[#allocation8 + $0xb8] sm:$0xff]  ;;  %v468_v10 = vld [vmem:[#allocation8 + $0xb0] sm:$0xff]  ;;  %v467_v11 = vld [vmem:[#allocation8 + $0xa8] sm:$0xff]  ;;  %s1299_s0 = scalar_lea.vmem %s1815_s10, 128  ;;  %p1892_p5 = scmp.ne.s32.totalorder %s1880_s11, 0 }
  0x7f   : > { %492 = vmatprep.subr.mxu1 %v475_v3  ;;  %v466_v12 = vld [vmem:[#allocation8 + $0xa0] sm:$0xff]  ;;  %v465_v13 = vld [vmem:[#allocation8 + $0x98] sm:$0xff]  ;;  %v464_v14 = vld [vmem:[#allocation8 + $0x90] sm:$0xff]  ;;  %p1300_p0 = scmp.ne.s32.totalorder %s1815_s10, %s1299_s0  ;;  %s1387_s25 = smov [#allocation10]  }
  0x80   : > { %493 = vmatpush1.msra.mxu1 %v474_v4  ;;  %v463_v15 = vld [vmem:[#allocation8 + $0x88] sm:$0xff]  ;;  %v462_v16 = vld [vmem:[#allocation8 + $0x80] sm:$0xff]  ;;  %v461_v17 = vld [vmem:[#allocation8 + $0x78] sm:$0xff]  ;;  %s1303_s8 = sshll.u32 %s1387_s25, 4  ;;  %s1304_s8 = int_to_ptr.vmem [resolvable:$false] %s1303_s8 }
  0x81   : > { %494 = vmatprep.subr.mxu1 %v473_v5  ;;  %v460_v18 = vld [vmem:[#allocation8 + $0x70] sm:$0xff]  ;;  %v459_v19 = vld [vmem:[#allocation8 + $0x68] sm:$0xff]  ;;  %v368_v20 = vld [vmem:[#allocation7 + $0x78] sm:$0xff]  ;;  %p1301_p3 = pnand %p1300_p0, %p1892_p5  ;;  %s1305_s29 = scalar_lea.vmem %s1304_s8, 256 }
  0x82   : > { %495 = vmatpush1.msra.mxu1 %v472_v6  ;;  %v367_v21 = vld [vmem:[#allocation7 + $0x70] sm:$0xff]  ;;  %v458_v22 = vld [vmem:[#allocation8 + $0x60] sm:$0xff]  ;;  %1005 = vmatpush3.msra.mxu0 %v368_v20  ;;  %v457_v23 = vld [vmem:[#allocation8 + $0x58] sm:$0xff]  ;;  %p1306_p9 = scmp.lt.s32.totalorder %s1815_s10, %s1304_s8  ;;  %p1307_p13 = scmp.lt.s32.totalorder %s1305_s29, %s1299_s0 }
  0x83   : > { %496 = vmatprep.subr.mxu1 %v471_v7  ;;  %1006 = vmatprep.subr.mxu0 %v1385_v0  ;;  %v366_v24 = vld [vmem:[#allocation7 + $0x68] sm:$0xff]  ;;  %v456_v25 = vld [vmem:[#allocation8 + $0x50] sm:$0xff]  ;;  %v365_v27 = vld [vmem:[#allocation7 + $0x60] sm:$0xff]  ;;  %p1302_p11 = pneg %p1301_p3 }
  0x84   : > { %497 = vmatpush1.msra.mxu1 %v470_v8  ;;  %1007 = vmatpush3.msra.mxu0 %v367_v21  ;;  %v455_v26 = vld [vmem:[#allocation8 + $0x48] sm:$0xff]  ;;  %v454_v28 = vld [vmem:[#allocation8 + $0x40] sm:$0xff]  ;;  %v453_v29 = vld [vmem:[#allocation8 + $0x38] sm:$0xff]  ;;  %p1308_p1 = por %p1307_p13, %p1306_p9 }
  0x85   : > { %498 = vmatprep.subr.mxu1 %v469_v9  ;;  %1008 = vmatprep.subr.mxu0 %v1385_v0  ;;  %v364_v30 = vld [vmem:[#allocation7 + $0x58] sm:$0xff]  ;;  %v452_v31 = vld [vmem:[#allocation8 + $0x30] sm:$0xff]  ;;  %v451_v32 = vld [vmem:[#allocation8 + $0x28] sm:$0xff] }
  0x86   : > { %499 = vmatpush1.msra.mxu1 %v468_v10  ;;  %1009 = vmatpush3.msra.mxu0 %v366_v24  ;;  %v363_v33 = vld [vmem:[#allocation7 + $0x50] sm:$0xff]  ;;  %v450_v34 = vld [vmem:[#allocation8 + $0x20] sm:$0xff]  ;;  %v449_v35 = vld [vmem:[#allocation8 + $0x18] sm:$0xff]  ;;  %p1309_p4 = pnand %p1308_p1, %p1302_p11 }
  0x87   : > { %500 = vmatprep.subr.mxu1 %v467_v11  ;;  %1010 = vmatprep.subr.mxu0 %v1385_v0  ;;  %v362_v36 = vld [vmem:[#allocation7 + $0x48] sm:$0xff]  ;;  %v448_v37 = vld [vmem:[#allocation8 + $0x10] sm:$0xff]  ;;  %v361_v39 = vld [vmem:[#allocation7 + $0x40] sm:$0xff] }
  0x88   : > { %501 = vmatpush1.msra.mxu1 %v466_v12  ;;  %1011 = vmatpush3.msra.mxu0 %v365_v27  ;;  %v447_v38 = vld [vmem:[#allocation8 + $0x8] sm:$0xff]  ;;  %v446_v40 = vld [vmem:[#allocation8] sm:$0xff]  ;;  %v360_v42 = vld [vmem:[#allocation7 + $0x38] sm:$0xff] }
  0x89   : > { %502 = vmatprep.subr.mxu1 %v465_v13  ;;  %1012 = vmatprep.subr.mxu0 %v1385_v0  ;;  %v337_v41 = vld [vmem:[%s1613_s7] sm:$0xff]  ;;  %v359_v43 = vld [vmem:[#allocation7 + $0x30] sm:$0xff]  ;;  %v338_v44 = vld [vmem:[%s1613_s7 + $0x8] sm:$0xff] }
  0x8a   : > { %503 = vmatpush1.msra.mxu1 %v464_v14  ;;  %1013 = vmatpush3.msra.mxu0 %v364_v30  ;;  %v358_v45 = vld [vmem:[#allocation7 + $0x28] sm:$0xff]  ;;  %v357_v46 = vld [vmem:[#allocation7 + $0x20] sm:$0xff]  ;;  %v339_v47 = vld [vmem:[%s1613_s7 + $0x10] sm:$0xff] }
  0x8b   : > { %504 = vmatprep.subr.mxu1 %v463_v15  ;;  %1014 = vmatprep.subr.mxu0 %v1385_v0  ;;  %v356_v48 = vld [vmem:[#allocation7 + $0x18] sm:$0xff]  ;;  %v355_v49 = vld [vmem:[#allocation7 + $0x10] sm:$0xff]  ;;  %v354_v51 = vld [vmem:[#allocation7 + $0x8] sm:$0xff] }
  0x8c   : > { %505 = vmatpush1.msra.mxu1 %v462_v16  ;;  %1015 = vmatpush3.msra.mxu0 %v363_v33  ;;  %v340_v50 = vld [vmem:[%s1613_s7 + $0x18] sm:$0xff]  ;;  %v353_v52 = vld [vmem:[#allocation7] sm:$0xff]  ;;  %v342_v55 = vld [vmem:[%s1613_s7 + $0x28] sm:$0xff] }
  0x8d   : > { %506 = vmatprep.subr.mxu1 %v461_v17  ;;  %1016 = vmatprep.subr.mxu0 %v1385_v0  ;;  %v336_v53 = vld [vmem:[%s1605_s20] sm:$0xff]  ;;  %v341_v54 = vld [vmem:[%s1613_s7 + $0x20] sm:$0xff]  ;;  %v346_v59 = vld [vmem:[%s1613_s7 + $0x48] sm:$0xff]  ;;  %s806_s20 = scalar_lea.sflag [#allocation4], %s1599_s12 }
  0x8e   : > { %507 = vmatpush1.msra.mxu1 %v460_v18  ;;  %1017 = vmatpush3.msra.mxu0 %v362_v36  ;;  %v343_v56 = vld [vmem:[%s1613_s7 + $0x30] sm:$0xff]  ;;  %v344_v57 = vld [vmem:[%s1613_s7 + $0x38] sm:$0xff]  ;;  %v345_v58 = vld [vmem:[%s1613_s7 + $0x40] sm:$0xff] }
  0x8f   : > { %508 = vmatprep.subr.mxu1 %v459_v19  ;;  %1018 = vmatprep.subr.mxu0 %v1385_v0  ;;  %v347_v60 = vld [vmem:[%s1613_s7 + $0x50] sm:$0xff]  ;;  %v348_v61 = vld [vmem:[%s1613_s7 + $0x58] sm:$0xff]  ;;  %v349_v62 = vld [vmem:[%s1613_s7 + $0x60] sm:$0xff] }
  0x90   : > { %509 = vmatpush1.msra.mxu1 %v458_v22  ;;  %1019 = vmatpush3.msra.mxu0 %v361_v39  ;;  %v350_v63 = vld [vmem:[%s1613_s7 + $0x68] sm:$0xff]  ;;  %v351_v1 = vld [vmem:[%s1613_s7 + $0x70] sm:$0xff]  ;;  %v352_v2 = vld [vmem:[%s1613_s7 + $0x78] sm:$0xff] }
  0x91   : > { %510 = vmatprep.subr.mxu1 %v457_v23  ;;  %1020 = vmatprep.subr.mxu0 %v1385_v0  ;;  %v478_v36 = vld [vmem:[%s1866_s5] sm:$0x3] }
  0x92   : > { %511 = vmatpush1.msra.mxu1 %v456_v25  ;;  %1021 = vmatpush3.msra.mxu0 %v360_v42 }
  0x93   : > { %512 = vmatprep.subr.mxu1 %v455_v26  ;;  %1022 = vmatprep.subr.mxu0 %v1385_v0 }
  0x94   : > { %513 = vmatpush1.msra.mxu1 %v454_v28  ;;  %1023 = vmatpush3.msra.mxu0 %v359_v43 }
  0x95   : > { %514 = vmatprep.subr.mxu1 %v453_v29  ;;  %1024 = vmatprep.subr.mxu0 %v1385_v0  ;;  %v480_v29 = vlaneseq }
  0x96   : > { %515 = vmatpush1.msra.mxu1 %v452_v31  ;;  %1025 = vmatpush3.msra.mxu0 %v358_v45 }
  0x97   : > { %516 = vmatprep.subr.mxu1 %v451_v32  ;;  %1026 = vmatprep.subr.mxu0 %v1385_v0  ;;  %v481_v32 = vshrl.u32 %v480_v29, 7 }
  0x98   : > { %517 = vmatpush1.msra.mxu1 %v450_v34  ;;  %1027 = vmatpush3.msra.mxu0 %v357_v46 }
  0x99   : > { %518 = vmatprep.subr.mxu1 %v449_v35  ;;  %1028 = vmatprep.subr.mxu0 %v1385_v0  ;;  %v482_v35 = vsub.s32 0, %v481_v32 }
  0x9a   : > { %519 = vmatpush1.msra.mxu1 %v448_v37  ;;  %1029 = vmatpush3.msra.mxu0 %v356_v48 }
  0x9b   : > { %520 = vmatprep.subr.mxu1 %v447_v38  ;;  %1030 = vmatprep.subr.mxu0 %v1385_v0  ;;  %v486_v38 = vsub.s32 1, %v481_v32 }
  0x9c   : > { %521 = vmatpush1.msra.mxu1 %v446_v40  ;;  %1031 = vmatpush3.msra.mxu0 %v355_v49  ;;  %v1724_v40 = vrot.slane %v478_v36, %v482_v35 }
  0x9d   : > { %555 = vmatmul.mubr.f32.vlgmr.msra.gmra.mxu1 %v337_v41  ;;  %1074 = vmatprep.subr.mxu1 %v1385_v0  ;;  %v1726_v42 = vrot.slane %v478_v36, %v486_v38 }
  0x9e   : > { %560 = vmatprep.mubr.f32.mxu1 %v1385_v0  ;;  %1032 = vmatprep.subr.mxu0 %v1385_v0 }
  0x9f   : > { %1033 = vmatpush3.msra.mxu0 %v354_v51 }
  0xa0   : > { %1034 = vmatprep.subr.mxu0 %v1385_v0 }
  0xa1   : > { %561 = vmatmul.mubr.f32.gmra.mxu1 %v338_v44  ;;  %1035 = vmatpush3.msra.mxu0 %v353_v52 }
  0xa2   : > { %566 = vmatprep.mubr.f32.mxu1 %v1385_v0  ;;  %1037 = vmatmul.mubr.f32.vlgmr.msra.gmra.mxu0 %v336_v53 }
  0xa3   : > { %1039 = vmatprep.subr.mxu0 %v1385_v0  ;;  %1071 = vmatprep.mubr.msk.f32.mxu0 %vm1386_vm0, %v1385_v0 }
  0xa5   : > { %567 = vmatmul.mubr.f32.gmra.mxu1 %v339_v47 }
  0xa6   : > { %572 = vmatprep.mubr.f32.mxu1 %v1385_v0 }
  0xa9   : > { %573 = vmatmul.mubr.f32.gmra.mxu1 %v340_v50 }
  0xaa   : > { %578 = vmatprep.mubr.f32.mxu1 %v1385_v0 }
  0xad   : > { %579 = vmatmul.mubr.f32.gmra.mxu1 %v341_v54 }
  0xae   : > { %584 = vmatprep.mubr.f32.mxu1 %v1385_v0 }
  0xb1   : > { %585 = vmatmul.mubr.f32.gmra.mxu1 %v342_v55 }
  0xb2   : > { %590 = vmatprep.mubr.f32.mxu1 %v1385_v0 }
  0xb5   : > { %591 = vmatmul.mubr.f32.gmra.mxu1 %v343_v56 }
  0xb6   : > { %596 = vmatprep.mubr.f32.mxu1 %v1385_v0 }
  0xb9   : > { %597 = vmatmul.mubr.f32.gmra.mxu1 %v344_v57 }
  0xba   : > { %602 = vmatprep.mubr.f32.mxu1 %v1385_v0 }
  0xbd   : > { %603 = vmatmul.mubr.f32.gmra.mxu1 %v345_v58 }
  0xbe   : > { %608 = vmatprep.mubr.f32.mxu1 %v1385_v0 }
  0xc1   : > { %609 = vmatmul.mubr.f32.gmra.mxu1 %v346_v59 }
  0xc2   : > { %614 = vmatprep.mubr.f32.mxu1 %v1385_v0 }
  0xc5   : > { %615 = vmatmul.mubr.f32.gmra.mxu1 %v347_v60 }
  0xc6   : > { %620 = vmatprep.mubr.f32.mxu1 %v1385_v0 }
  0xc9   : > { %621 = vmatmul.mubr.f32.gmra.mxu1 %v348_v61 }
  0xca   : > { %626 = vmatprep.mubr.f32.mxu1 %v1385_v0 }
  0xcd   : > { %627 = vmatmul.mubr.f32.gmra.mxu1 %v349_v62 }
  0xce   : > { %632 = vmatprep.mubr.f32.mxu1 %v1385_v0 }
  0xd1   : > { %633 = vmatmul.mubr.f32.gmra.mxu1 %v350_v63 }
  0xd2   : > { %638 = vmatprep.mubr.f32.mxu1 %v1385_v0 }
  0xd5   : > { %639 = vmatmul.mubr.f32.gmra.mxu1 %v351_v1 }
  0xd6   : > { %644 = vmatprep.mubr.f32.mxu1 %v1385_v0 }
  0xd9   : > { %645 = vmatmul.mubr.f32.gmra.mxu1 %v352_v2 }
  0xda   : > { %1106 = vmatprep.mubr.msk.f32.mxu1 %vm1386_vm0, %v1385_v0 }
 0x15d   : > { %v1684_v3 = vpop.f32.mrf.mxu1 }
 0x15f   : > { %v1686_v4 = vpop.f32.mrf.mxu1 }
 0x161   : > { %v1688_v5 = vpop.f32.mrf.mxu1 }
 0x162   : > { %v1700_v11 = vpop.f32.mrf.mxu0 }
 0x163   : > { %v1690_v6 = vpop.f32.mrf.mxu1 }
 0x164   : > { %v1038_v13 = vpop.f32.mrf.mxu0 }
 0x165   : > { %v1692_v7 = vpop.f32.mrf.mxu1  ;;  %v565_v13 = vadd.f32 %v1690_v6, %v1726_v42 }
 0x167   : > { %v1694_v8 = vpop.f32.mrf.mxu1 }
 0x168   : > { %v571_v1 = vadd.f32 %v1694_v8, %v1726_v42 }
 0x169   : > { %v1696_v9 = vpop.f32.mrf.mxu1 }
 0x16b   : > { %v1698_v10 = vpop.f32.mrf.mxu1 }
 0x16c   : > { %v577_v63 = vadd.f32 %v1698_v10, %v1726_v42  ;;  %v559_v10 = vadd.f32 %v1686_v4, %v1726_v42 }
 0x16d   : > { %v1702_v12 = vpop.f32.mrf.mxu1 }
 0x16e   : > { %v581_v4 = vadd.f32 %v1702_v12, %v1724_v40  ;;  %v947_v12 = vld [vmem:[%s1864_s3] ss:$0 sm:$0xff] }
 0x16f   : > { %v1704_v14 = vpop.f32.mrf.mxu1 }
 0x170   : > { %v583_v61 = vadd.f32 %v1704_v14, %v1726_v42 }
 0x171   : > { %v1706_v15 = vpop.f32.mrf.mxu1 }
 0x172   : > { %v587_v14 = vadd.f32 %v1706_v15, %v1724_v40  ;;  %v563_v15 = vadd.f32 %v1688_v5, %v1724_v40 }
 0x173   : > { %v1708_v16 = vpop.f32.mrf.mxu1 }
 0x174   : > { %v589_v60 = vadd.f32 %v1708_v16, %v1726_v42  ;;  %v575_v16 = vadd.f32 %v1696_v9, %v1724_v40  ;;  %v557_v9 = vadd.f32 %v1684_v3, %v1724_v40 }
 0x175   : > { %v1710_v17 = vpop.f32.mrf.mxu1 }
 0x176   : > { %v593_v6 = vadd.f32 %v1710_v17, %v1724_v40  ;;  %v569_v17 = vadd.f32 %v1692_v7, %v1724_v40  ;;  %v722_v7 = vand.u32 127, %v480_v29 }
 0x177   : > { %v1712_v18 = vpop.f32.mrf.mxu1 }
 0x178   : > { %v595_v58 = vadd.f32 %v1712_v18, %v1726_v42  ;;  %v443_v18 = vadd.f32 %v947_v12, %v1700_v11  ;;  %vm723_vm1 = vcmp.lt.s32.totalorder %v722_v7, 8 }
 0x179   : > { %v1714_v19 = vpop.f32.mrf.mxu1 }
 0x17a   : > { %v599_v8 = vadd.f32 %v1714_v19, %v1724_v40 }
 0x17b   : > { %v600_v20 = vpop.f32.mrf.mxu1 }
 0x17c   : > { %v601_v57 = vadd.f32 %v600_v20, %v1726_v42 }
 0x17d   : > { %v1716_v21 = vpop.f32.mrf.mxu1 }
 0x17e   : > { %v605_v2 = vadd.f32 %v1716_v21, %v1724_v40 }
 0x17f   : > { %v606_v22 = vpop.f32.mrf.mxu1 }
 0x180   : > { %v607_v55 = vadd.f32 %v606_v22, %v1726_v42 }
 0x181   : > { %v1718_v23 = vpop.f32.mrf.mxu1 }
 0x182   : > { %v611_v62 = vadd.f32 %v1718_v23, %v1724_v40 }
 0x183   : > { %v612_v24 = vpop.f32.mrf.mxu1 }
 0x184   : > { %v613_v54 = vadd.f32 %v612_v24, %v1726_v42 }
 0x185   : > { %v616_v25 = vpop.f32.mrf.mxu1 }
 0x186   : > { %v617_v59 = vadd.f32 %v616_v25, %v1724_v40 }
 0x187   : > { %v618_v26 = vpop.f32.mrf.mxu1 }
 0x188   : > { %v619_v52 = vadd.f32 %v618_v26, %v1726_v42 }
 0x189   : > { %v622_v27 = vpop.f32.mrf.mxu1 }
 0x18a   : > { %v623_v56 = vadd.f32 %v622_v27, %v1724_v40 }
 0x18b   : > { %v624_v28 = vpop.f32.mrf.mxu1 }
 0x18c   : > { %v625_v51 = vadd.f32 %v624_v28, %v1726_v42 }
 0x18d   : > { %v628_v30 = vpop.f32.mrf.mxu1 }
 0x18e   : > { %v629_v53 = vadd.f32 %v628_v30, %v1724_v40 }
 0x18f   : > { %v630_v31 = vpop.f32.mrf.mxu1 }
 0x190   : > { %v631_v49 = vadd.f32 %v630_v31, %v1726_v42 }
 0x191   : > { %v634_v33 = vpop.f32.mrf.mxu1 }
 0x192   : > { %v635_v50 = vadd.f32 %v634_v33, %v1724_v40 }
 0x193   : > { %v636_v34 = vpop.f32.mrf.mxu1 }
 0x194   : > { %v637_v48 = vadd.f32 %v636_v34, %v1726_v42 }
 0x195   : > { %v640_v37 = vpop.f32.mrf.mxu1 }
 0x196   : > { %v641_v46 = vadd.f32 %v640_v37, %v1724_v40 }
 0x197   : > { %v642_v39 = vpop.f32.mrf.mxu1 }
 0x198   : > { %v643_v47 = vadd.f32 %v642_v39, %v1726_v42 }
 0x199   : > { %v646_v41 = vpop.f32.mrf.mxu1 }
 0x19a   : > { %v647_v43 = vadd.f32 %v646_v41, %v1724_v40 }
 0x19b   : > { %v648_v44 = vpop.f32.mrf.mxu1 }
 0x19c   : > { %v649_v45 = vadd.f32 %v648_v44, %v1726_v42  ;;  %1040 = vmatpush3.xpose.msra.mxu0 %v647_v43 }
 0x19d   : > { %1041 = vmatprep.subr.mxu0 %v1385_v0 }
 0x19e   : > { %1075 = vmatpush3.msra.mxu1 %v649_v45 }
 0x19f   : > { %1076 = vmatprep.subr.mxu1 %v1385_v0 }
 0x1a0   : > { %1042 = vmatpush3.xpose.msra.mxu0 %v641_v46  ;;  %1077 = vmatpush3.msra.mxu1 %v643_v47 }
 0x1a1   : > { %1078 = vmatprep.subr.mxu1 %v1385_v0  ;;  %1043 = vmatprep.subr.mxu0 %v1385_v0 }
 0x1a2   : > { %1079 = vmatpush3.msra.mxu1 %v637_v48 }
 0x1a3   : > { %1080 = vmatprep.subr.mxu1 %v1385_v0 }
 0x1a4   : > { %1044 = vmatpush3.xpose.msra.mxu0 %v635_v50  ;;  %1081 = vmatpush3.msra.mxu1 %v631_v49 }
 0x1a5   : > { %1082 = vmatprep.subr.mxu1 %v1385_v0  ;;  %1045 = vmatprep.subr.mxu0 %v1385_v0 }
 0x1a6   : > { %1083 = vmatpush3.msra.mxu1 %v625_v51 }
 0x1a7   : > { %1084 = vmatprep.subr.mxu1 %v1385_v0 }
 0x1a8   : > { %1046 = vmatpush3.xpose.msra.mxu0 %v629_v53  ;;  %1085 = vmatpush3.msra.mxu1 %v619_v52 }
 0x1a9   : > { %1086 = vmatprep.subr.mxu1 %v1385_v0  ;;  %1047 = vmatprep.subr.mxu0 %v1385_v0 }
 0x1aa   : > { %1087 = vmatpush3.msra.mxu1 %v613_v54 }
 0x1ab   : > { %1088 = vmatprep.subr.mxu1 %v1385_v0 }
 0x1ac   : > { %1048 = vmatpush3.xpose.msra.mxu0 %v623_v56  ;;  %1089 = vmatpush3.msra.mxu1 %v607_v55 }
 0x1ad   : > { %1090 = vmatprep.subr.mxu1 %v1385_v0  ;;  %1049 = vmatprep.subr.mxu0 %v1385_v0 }
 0x1ae   : > { %1091 = vmatpush3.msra.mxu1 %v601_v57 }
 0x1af   : > { %1092 = vmatprep.subr.mxu1 %v1385_v0 }
 0x1b0   : > { %1050 = vmatpush3.xpose.msra.mxu0 %v617_v59  ;;  %1093 = vmatpush3.msra.mxu1 %v595_v58 }
 0x1b1   : > { %1094 = vmatprep.subr.mxu1 %v1385_v0  ;;  %1051 = vmatprep.subr.mxu0 %v1385_v0 }
 0x1b2   : > { %1095 = vmatpush3.msra.mxu1 %v589_v60 }
 0x1b3   : > { %1096 = vmatprep.subr.mxu1 %v1385_v0 }
 0x1b4   : > { %1052 = vmatpush3.xpose.msra.mxu0 %v611_v62  ;;  %1097 = vmatpush3.msra.mxu1 %v583_v61 }
 0x1b5   : > { %1098 = vmatprep.subr.mxu1 %v1385_v0  ;;  %1053 = vmatprep.subr.mxu0 %v1385_v0 }
 0x1b6   : > { %1099 = vmatpush3.msra.mxu1 %v577_v63 }
 0x1b7   : > { %1100 = vmatprep.subr.mxu1 %v1385_v0 }
 0x1b8   : > { %1054 = vmatpush3.xpose.msra.mxu0 %v605_v2  ;;  %1101 = vmatpush3.msra.mxu1 %v571_v1 }
 0x1b9   : > { %1102 = vmatprep.subr.mxu1 %v1385_v0  ;;  %1055 = vmatprep.subr.mxu0 %v1385_v0 }
 0x1ba   : > { %1103 = vmatpush3.msra.mxu1 %v565_v13 }
 0x1bb   : > { %1104 = vmatprep.subr.mxu1 %v1385_v0 }
 0x1bc   : > { %1056 = vmatpush3.xpose.msra.mxu0 %v599_v8  ;;  %1105 = vmatpush3.msra.mxu1 %v559_v10 }
 0x1bd   : > { %1057 = vmatprep.subr.mxu0 %v1385_v0 }
 0x1c0   : > { %1058 = vmatpush3.xpose.msra.mxu0 %v593_v6 }
 0x1c1   : > { %1059 = vmatprep.subr.mxu0 %v1385_v0 }
 0x1c4   : > { %1060 = vmatpush3.xpose.msra.mxu0 %v587_v14 }
 0x1c5   : > { %1061 = vmatprep.subr.mxu0 %v1385_v0 }
 0x1c8   : > { %1062 = vmatpush3.xpose.msra.mxu0 %v581_v4 }
 0x1c9   : > { %1063 = vmatprep.subr.mxu0 %v1385_v0 }
 0x1cc   : > { %1064 = vmatpush3.xpose.msra.mxu0 %v575_v16 }
 0x1cd   : > { %1065 = vmatprep.subr.mxu0 %v1385_v0 }
 0x1d0   : > { %1066 = vmatpush3.xpose.msra.mxu0 %v569_v17 }
 0x1d1   : > { %1067 = vmatprep.subr.mxu0 %v1385_v0 }
 0x1d4   : > { %1068 = vmatpush3.xpose.msra.mxu0 %v563_v15 }
 0x1d5   : > { %1069 = vmatprep.subr.mxu0 %v1385_v0 }
 0x1d8   : > { %1070 = vmatpush3.xpose.msra.mxu0 %v557_v9 }
 0x1db   : > { %1072 = vmatmul.mubr.f32.vlgmr.msra.gmra.mxu0 %v443_v18 }
 0x29b   : > { %v717_v19 = vpop.f32.mrf.mxu0 }
 0x29c   : > { %v724_v5 = vsel %vm723_vm1, %v717_v19, -1e+30 }
 0x29d   : > { %725 = vmax.xlane.f32.xlu0 %v724_v5  ;;  %v1073_v20 = vpop.f32.mrf.mxu0 }
 0x326   : > { %v726_v21 = vpop.xlane.xlu0 %725 }
 0x327   : > { %v727_v22 = vsub.f32 %v724_v5, %v726_v21 }
 0x329   : > { %v728_v23 = vmul.f32 1.442695, %v727_v22 }
 0x32b   : > { %1187 = vpow2.f32 %v728_v23 }
 0x338   : > { %v1188_v0 = vpop.eup %1187 }
 0x339   : > { %730 = vadd.xlane.f32.xlu0 %v1188_v0 }
 0x3c2   : > { %v731_v3 = vpop.xlane.xlu0 %730 }
 0x3c3   : > { %1189 = vrcp.f32 %v731_v3 }
 0x3d0   : > { %v1190_v11 = vpop.eup %1189 }
 0x3d1   : > { %v733_v24 = vmul.f32 %v1190_v11, %v1188_v0 }
 0x3d3   : > { %1107 = vmatmul.mubr.f32.vlgmr.msra.gmra.mxu1 %v733_v24 }
 0x493   : > { %v800_v25 = vpop.f32.mrf.mxu1 }
 0x494   : > { %804 = vst [vmem:[%s335_s18] sm:$0xff] %v800_v25 }
 0x495   : > { %v1108_v26 = vpop.f32.mrf.mxu1 }
 0x496   : > { %1312 = shalt.err (!%p1309_p4)
}
 0x497   : > { %s1313_s16 = scalar_lea.hbm %s1820_s17, 128  ;;  %s1317_s27 = scalar_lea.hbm %s1867_s6, 256 }
 0x498   : > { %p1314_p10 = scmp.ne.s32.totalorder %s1820_s17, %s1313_s16  ;;  %p1318_p2 = scmp.lt.s32.totalorder %s1820_s17, %s1867_s6 }
 0x499   : > { %p1319_p6 = scmp.lt.s32.totalorder %s1317_s27, %s1313_s16 }
 0x49a   : > { %p1315_p7 = pnand %p1314_p10, %p1892_p5 }
 0x49b   : > { %p1320_p12 = por %p1319_p6, %p1318_p2 }
 0x49c   : > { %p1316_p8 = pneg %p1315_p7 }
 0x49e   : > { %p1321_p0 = pnand %p1320_p12, %p1316_p8 }
 0x4a0   : > { %1324 = shalt.err (!%p1321_p0)
}
 0x4a1   : > { %1121 = dma.vmem_to_hbm [thread:$0]  (%p1892_p5), %s1815_s10, 128, %s1820_s17, %s806_s20  }
 0x4a2 PF: > { %s831_s15 = sand.u32 1, %s1363_s21   ;;  %p1893_p3 = scmp.ne.s32.totalorder %s1876_s28, 0 }
 0x4a3   : > { %p1894_p11 = scmp.ge.s32.totalorder %s1375_s24, 2  ;;  %s832_s18 = scalar_lea.sflag [#allocation4], %s831_s15 }
 0x4a5   : > { %p1138_p9 = pnand %p1894_p11, %p1893_p3 }
 0x4a7   : > { %p1139_p13 = pneg %p1138_p9 }
 0x4a9   : > { %1358 = dma.done.wait (%p1139_p13), %s832_s18, 128  }
 0x4aa   : > { %1360 = vsyncadd (%p1139_p13), %s832_s18, 4294967168  ;;  %p23_p1 = scmp.ge.s32.totalorder %s1498_s26, 4   ;;  %s1895_s21 = smov %s1367_s22 }
 0x4ab   : > { %s1896_s22 = smov %s1371_s23  ;;  %s1897_s23 = smov %s1507_s9 }
 0x4ac   : > { %s1898_s24 = smov %s1498_s26  ;;  %25 = sbr.rel (!%p23_p1) target bundleno = 11 (0xb), region = 110 }
 0x4b1   :  { %837 = vsyncpa [#allocation3], 1 }
 0x4b2   :  { %839 = vsyncpa [#allocation3 + $0x1], 1 }
 0x4b3   :  { %840 = vsyncpa [#allocation6], 1 }
 0x4b4   :  { %842 = vsyncpa [#allocation6 + $0x1], 1 }
 0x4b5   :  { %843 = vsyncpa [#allocation9], 1 }
 0x4b6   :  { %844 = vsyncpa [#allocation4], 1 }
 0x4b7   :  { %846 = vsyncpa [#allocation4 + $0x1], 1 }

// kernel: tpu_custom_call.1
= control target key start
LH: loop header
LB: loop body
LE: loop exit
PB: predicated region body
PF: predicated region fallthrough
CT: control target
= control target key end

     0   :  { %s1861_s0 = inlined_call_operand.hbm [shape: f32[2,8,128], index: 0, kind: input, shape index: {}]   ;;  %s1862_s1 = inlined_call_operand.hbm [shape: f32[2,128,128], index: 1, kind: input, shape index: {}]   ;;  %s1863_s2 = inlined_call_operand.hbm [shape: f32[128,128], index: 2, kind: input, shape index: {}]   ;;  %s1864_s3 = inlined_call_operand.vmem [shape: f32[1,128], index: 3, kind: input, shape index: {}]   ;;  %s1865_s4 = inlined_call_operand.hbm [shape: f32[128,256], index: 4, kind: input, shape index: {}]   ;;  %s1866_s5 = inlined_call_operand.vmem [shape: f32[1,256], index: 5, kind: input, shape index: {}]   ;;  %s1867_s6 = inlined_call_operand.hbm [shape: f32[2,8,128], index: 6, kind: output, shape index: {}]  }
   0x1   :  { %1873 = sst [smem:[#allocation16_spill]] %s1861_s0 }
   0x2   :  { %1874 = sst [smem:[#allocation17_spill]] %s1863_s2 }
   0x3   :  { %11 = vsyncpa [#allocation3], 0 }
   0x4   :  { %13 = vsyncpa [#allocation3 + $0x1], 0 }
   0x5   :  { %14 = vsyncpa [#allocation6], 0 }
   0x6   :  { %16 = vsyncpa [#allocation6 + $0x1], 0 }
   0x7   :  { %17 = vsyncpa [#allocation9], 0 }
   0x8   :  { %18 = vsyncpa [#allocation4], 0 }
   0x9   :  { %20 = vsyncpa [#allocation4 + $0x1], 0  ;;  %s1423_s21 = smov 0   ;;  %s1425_s22 = smov 0  }
   0xa   :  { %s1427_s23 = smov 0   ;;  %s1429_s24 = smov 0  }
   0xb LB: > { %s1444_s25 = sadd.s32 4294967295, %s1375_s24   ;;  %s931_s26 = sadd.s32 4294967294, %s1375_s24   ;;  %s1375_s24 = sphi %s1429_s24, %s1898_s24   ;;  %s1371_s23 = sphi %s1427_s23, %s1897_s23   ;;  %s1367_s22 = sphi %s1425_s22, %s1896_s22   ;;  %s1363_s21 = sphi %s1423_s21, %s1895_s21  }
   0xc   : > { %p46_p0 = scmp.ne.s32.totalorder %s1367_s22, %s1363_s21  ;;  %p1870_p1 = scmp.eq.s32.totalorder %s1444_s25, 0 }
   0xd   : > { %p180_p2 = scmp.eq.s32.totalorder %s1444_s25, 1  ;;  %p186_p3 = scmp.eq.s32.totalorder %s931_s26, 1 }
   0xe   : > { %p1453_p4 = por %p1870_p1, %p46_p0  ;;  %p932_p5 = scmp.ge.s32.totalorder %s1375_s24, 1 }
   0xf   : > { %p1458_p6 = por %p186_p3, %p46_p0  ;;  %p193_p7 = scmp.lt.s32.totalorder %s1375_s24, 3 }
  0x10   : > { %s1875_s27 = scalar_select %p1453_p4, 1, 0 }
  0x11   : > { %s1876_s28 = scalar_select %p1458_p6, 1, 0 }
  0x12   : > { %p1463_p8 = pnand %p932_p5, %p193_p7  ;;  %s1377_s30 = smov [#allocation7]  }
  0x13   : > { %s205_s7 = sshll.u32 %s1377_s30, 4  ;;  %s1378_s9 = smov [#allocation8]   ;;  %s206_s7 = int_to_ptr.vmem [resolvable:$true] %s205_s7 }
  0x14   : > { %p1123_p9 = pneg %p1463_p8  ;;  %s221_s10 = sshll.u32 %s1378_s9, 4  ;;  %s222_s10 = int_to_ptr.vmem [resolvable:$true] %s221_s10 }
  0x15   : > { %s1202_s11 = scalar_lea.vmem %s206_s7, 2048  ;;  %p1210_p5 = scmp.lt.s32.totalorder %s206_s7, %s206_s7 }
  0x16   : > { %p1472_p11 = pnand %p1123_p9, %p1870_p1  ;;  %p1203_p13 = scmp.ne.s32.totalorder %s206_s7, %s1202_s11 }
  0x17   : > { %p1211_p7 = scmp.lt.s32.totalorder %s1202_s11, %s1202_s11 }
  0x18   : > { %p1193_p12 = pneg %p1472_p11 }
  0x19   : > { %p1212_p10 = por %p1211_p7, %p1210_p5 }
  0x1a   : > { %p1205_p0 = pnand %p1203_p13, %p1193_p12 }
  0x1c   : > { %p1206_p3 = pneg %p1205_p0 }
  0x1e   : > { %p1213_p9 = pnand %p1212_p10, %p1206_p3 }
  0x20   : > { %1216 = shalt.err (!%p1213_p9)
}
  0x21   : > { %s1868_s12 = smov 128   ;;  %s1869_s13 = smov 8  }
  0x22   : > { %s1879_s2 = sld [smem:[#allocation17_spill]]  ;;  %s1228_s16 = scalar_lea.vmem %s222_s10, 4096 }
  0x23   : > { %p1229_p13 = scmp.ne.s32.totalorder %s222_s10, %s1228_s16  ;;  %p1236_p10 = scmp.lt.s32.totalorder %s222_s10, %s222_s10 }
  0x24   : > { %p1237_p3 = scmp.lt.s32.totalorder %s1228_s16, %s1228_s16 }
  0x25   : > { %p1231_p0 = pnand %p1229_p13, %p1193_p12 }
  0x26   : > { %p1238_p7 = por %p1237_p3, %p1236_p10 }
  0x27   : > { %p1232_p5 = pneg %p1231_p0 }
  0x28   : > { %1126 = dma.hbm_to_vmem [thread:$0]  (!%p1472_p11), %s1879_s2, 2048, %s206_s7, [#allocation6], %s1868_s12, %s1868_s12, %s1869_s13  }
  0x29   : > { %p1239_p9 = pnand %p1238_p7, %p1232_p5 }
  0x2b   : > { %1242 = shalt.err (!%p1239_p9)
}
  0x2c   : > { %s1381_s17 = smov 256   ;;  %s1382_s18 = smov 16  }
  0x2d   : > { %1129 = dma.hbm_to_vmem [thread:$0]  (!%p1472_p11), %s1865_s4, 4096, %s222_s10, [#allocation9], %s1381_s17, %s1381_s17, %s1382_s18  }
  0x2e   : > { %s1498_s26 = sadd.s32 1, %s1375_s24   ;;  %s33_s7 = sadd.s32 1, %s1371_s23 }
  0x2f   : > { %s30_s30 = ssub.s32 %s1375_s24, %s1498_s26  ;;  %p40_p13 = scmp.ne.s32.totalorder %s1371_s23, %s1367_s22 }
  0x30   : > { %p31_p12 = scmp.eq.s32.totalorder %s30_s30, 0  ;;  %p41_p0 = scmp.eq.s32.totalorder %s1375_s24, 0 }
  0x31   : > { %p1511_p10 = por %p180_p2, %p40_p13  ;;  %p1143_p3 = scmp.lt.s32.totalorder %s1375_s24, 2 }
  0x32   : > { %s1507_s9 = scalar_select %p31_p12, %s1371_s23, %s33_s7  }
  0x33   : > { %p42_p5 = por %p41_p0, %p40_p13  ;;  %s1517_s8 = sand.u32 1, %s1371_s23  }
  0x34   : > { %s1880_s11 = scalar_select %p1511_p10, 1, 0 }
  0x35   : > { %s936_s10 = sshll.u32 %s1517_s8, 3  ;;  %s937_s14 = sshll.u32 %s1375_s24, 7 }
  0x36   : > { %s1881_s0 = sld [smem:[#allocation16_spill]]  ;;  %s242_s18 = scalar_lea.vmem [#allocation2], %s936_s10 }
  0x37   : > { %s249_s19 = sshll.u32 %s242_s18, 4  ;;  %p1528_p2 = pnand %p1143_p3, %p42_p5  ;;  %s1526_s19 = int_to_ptr.vmem [resolvable:$true] %s249_s19 }
  0x38   : > { %s239_s12 = scalar_lea.sflag [#allocation3], %s1517_s8 }
  0x39   : > { %p1245_p7 = pneg %p1528_p2 }
  0x3c   : > { %s1524_s17 = scalar_lea.hbm %s1881_s0, %s937_s14  ;;  %s1248_s15 = scalar_lea.hbm %s1881_s0, 256 }
  0x3d   : > { %s1243_s13 = scalar_lea.hbm %s1524_s17, 128  ;;  %p1249_p13 = scmp.lt.s32.totalorder %s1524_s17, %s1881_s0 }
  0x3e   : > { %p1244_p11 = scmp.ne.s32.totalorder %s1524_s17, %s1243_s13  ;;  %p1250_p0 = scmp.lt.s32.totalorder %s1248_s15, %s1243_s13 }
  0x40   : > { %p1246_p9 = pnand %p1245_p7, %p1244_p11  ;;  %p1251_p5 = por %p1250_p0, %p1249_p13 }
  0x42   : > { %p1247_p12 = pneg %p1246_p9 }
  0x44   : > { %p1252_p3 = pnand %p1251_p5, %p1247_p12 }
  0x46   : > { %1255 = shalt.err (!%p1252_p3)
}
  0x47   : > { %s1256_s7 = scalar_lea.vmem %s1526_s19, 128  ;;  %s1383_s10 = smov [#allocation2]  }
  0x48   : > { %p1257_p1 = scmp.ne.s32.totalorder %s1526_s19, %s1256_s7  ;;  %s1261_s14 = sshll.u32 %s1383_s10, 4  ;;  %s1262_s14 = int_to_ptr.vmem [resolvable:$false] %s1261_s14 }
  0x49   : > { %s1263_s30 = scalar_lea.vmem %s1262_s14, 256  ;;  %p1264_p6 = scmp.lt.s32.totalorder %s1526_s19, %s1262_s14 }
  0x4a   : > { %p1259_p11 = pnand %p1257_p1, %p1245_p7  ;;  %p1265_p10 = scmp.lt.s32.totalorder %s1263_s30, %s1256_s7 }
  0x4c   : > { %p1260_p9 = pneg %p1259_p11  ;;  %p1266_p4 = por %p1265_p10, %p1264_p6 }
  0x4e   : > { %p1267_p13 = pnand %p1266_p4, %p1260_p9 }
  0x50   : > { %1270 = shalt.err (!%p1267_p13)
}
  0x51   : > { %1133 = dma.hbm_to_vmem [thread:$0]  (!%p1528_p2), %s1524_s17, 128, %s1526_s19, %s239_s12  }
  0x52   : > { %s1883_s13 = sshll.u32 %s1517_s8, 7  ;;  %s952_s18 = sshll.u32 %s1375_s24, 11 }
  0x53   : > { %s260_s15 = scalar_lea.vmem [#allocation5], %s1883_s13  ;;  %s1567_s7 = scalar_lea.hbm %s1862_s1, %s952_s18 }
  0x54   : > { %s267_s16 = sshll.u32 %s260_s15, 4  ;;  %s1884_s14 = sand.u32 1, %s1375_s24   ;;  %s1561_s16 = int_to_ptr.vmem [resolvable:$true] %s267_s16 }
  0x55   : > { %s257_s0 = scalar_lea.sflag [#allocation6], %s1884_s14  ;;  %s1271_s2 = scalar_lea.hbm %s1567_s7, 2048 }
  0x56   : > { %p1272_p1 = scmp.ne.s32.totalorder %s1567_s7, %s1271_s2  ;;  %s1276_s17 = scalar_lea.hbm %s1862_s1, 4096 }
  0x57   : > { %p1277_p10 = scmp.lt.s32.totalorder %s1567_s7, %s1862_s1  ;;  %p1278_p12 = scmp.lt.s32.totalorder %s1276_s17, %s1271_s2 }
  0x58   : > { %p1274_p4 = pnand %p1272_p1, %p1245_p7 }
  0x59   : > { %p1279_p0 = por %p1278_p12, %p1277_p10 }
  0x5a   : > { %p1275_p6 = pneg %p1274_p4 }
  0x5c   : > { %p1280_p5 = pnand %p1279_p0, %p1275_p6 }
  0x5e   : > { %1283 = shalt.err (!%p1280_p5)
}
  0x5f   : > { %s1284_s15 = scalar_lea.vmem %s1561_s16, 2048  ;;  %s1384_s18 = smov [#allocation5]  }
  0x60   : > { %p1285_p3 = scmp.ne.s32.totalorder %s1561_s16, %s1284_s15  ;;  %s1289_s10 = sshll.u32 %s1384_s18, 4  ;;  %s1290_s10 = int_to_ptr.vmem [resolvable:$false] %s1289_s10 }
  0x61   : > { %s1291_s30 = scalar_lea.vmem %s1290_s10, 4096  ;;  %p1292_p13 = scmp.lt.s32.totalorder %s1561_s16, %s1290_s10 }
  0x62   : > { %p1287_p11 = pnand %p1285_p3, %p1245_p7  ;;  %p1293_p1 = scmp.lt.s32.totalorder %s1291_s30, %s1284_s15 }
  0x64   : > { %p1288_p9 = pneg %p1287_p11  ;;  %p1294_p4 = por %p1293_p1, %p1292_p13 }
  0x66   : > { %p1295_p10 = pnand %p1294_p4, %p1288_p9 }
  0x68   : > { %1298 = shalt.err (!%p1295_p10)
}
  0x69   : > { %s1885_s2 = smov 8   ;;  %s1886_s14 = smov 128  }
  0x6a   : > { %1136 = dma.hbm_to_vmem [thread:$0]  (!%p1528_p2), %s1567_s7, 2048, %s1561_s16, %s257_s0, %s1886_s14, %s1886_s14, %s1885_s2  }
  0x6b   : > { %279 = sbr.rel (%p1463_p8) target bundleno = 1186 (0x4a2), region = 44  ;;  %s1599_s12 = sand.u32 (!%p1463_p8), 1, %s1367_s22  }
  0x6c   : > { %s942_s8 = sshll.u32 (!%p1463_p8), %s1599_s12, 3  ;;  %s282_s17 = scalar_lea.sflag (!%p1463_p8), [#allocation3], %s1599_s12 }
  0x6d   : > { %s1605_s20 = scalar_lea.vmem (!%p1463_p8), [#allocation2], %s942_s8  ;;  %p1887_p7 = scmp.ne.s32.totalorder (!%p1463_p8), %s1875_s27, 0 }
  0x70   : > { %1342 = dma.done.wait (%p1887_p7), %s282_s17, 128  }
  0x71   : > { %1344 = vsyncadd (%p1887_p7), %s282_s17, 4294967168  ;;  %s290_s0 = sand.u32 1, %s1444_s25   ;;  %s943_s29 = sshll.u32 %s1599_s12, 7 }
  0x72   : > { %s291_s16 = scalar_lea.sflag [#allocation6], %s290_s0  ;;  %s1613_s7 = scalar_lea.vmem [#allocation5], %s943_s29 }
  0x73   : > { %1346 = dma.done.wait (%p1887_p7), %s291_s16, 2048  }
  0x74   : > { %1348 = vsyncadd (%p1887_p7), %s291_s16, 4294965248  ;;  %p1888_p8 = scmp.eq.s32.totalorder %s1444_s25, 0 }
  0x76   : > { %1350 = dma.done.wait (%p1888_p8), [#allocation6], 2048   ;;  %p1889_p2 = pmov %p1888_p8 }
  0x78   : > { %1352 = vsyncadd (%p1889_p2), [#allocation6], 4294965248  ;;  %p1890_p6 = pmov %p1889_p2 }
  0x79   : > { %p1891_p12 = pmov %p1889_p2 }
  0x7a   : > { %1354 = dma.done.wait (%p1890_p6), [#allocation9], 4096  }
  0x7b   : > { %1356 = vsyncadd (%p1891_p12), [#allocation9], 4294963200  ;;  %v1385_v0 = vmov 0.0   ;;  %vm1386_vm0 = vmmov 0   ;;  %v477_v1 = vld [vmem:[#allocation8 + $0xf8] sm:$0xff]  ;;  %v476_v2 = vld [vmem:[#allocation8 + $0xf0] sm:$0xff] }
  0x7c   : > { %554 = vmatprep.mubr.f32.mxu1 %v1385_v0  ;;  %1004 = vmatprep.subr.mxu0 %v1385_v0  ;;  %v475_v3 = vld [vmem:[#allocation8 + $0xe8] sm:$0xff]  ;;  %v474_v4 = vld [vmem:[#allocation8 + $0xe0] sm:$0xff]  ;;  %v473_v5 = vld [vmem:[#allocation8 + $0xd8] sm:$0xff]  ;;  %s335_s18 = scalar_lea.vmem [#allocation10], %s942_s8  ;;  %s949_s30 = sshll.u32 %s1444_s25, 7 }
  0x7d   : > { %1036 = vmatprep.mubr.msk.f32.mxu0 %vm1386_vm0, %v1385_v0  ;;  %490 = vmatprep.subr.mxu1 %v477_v1  ;;  %v472_v6 = vld [vmem:[#allocation8 + $0xd0] sm:$0xff]  ;;  %v471_v7 = vld [vmem:[#allocation8 + $0xc8] sm:$0xff]  ;;  %v470_v8 = vld [vmem:[#allocation8 + $0xc0] sm:$0xff]  ;;  %s819_s10 = sshll.u32 %s335_s18, 4  ;;  %s1820_s17 = scalar_lea.hbm %s1867_s6, %s949_s30  ;;  %s1815_s10 = int_to_ptr.vmem [resolvable:$true] %s819_s10 }
  0x7e   : > { %491 = vmatpush1.msra.mxu1 %v476_v2  ;;  %v469_v9 = vld [vmem:[#allocation8 + $0xb8] sm:$0xff]  ;;  %v468_v10 = vld [vmem:[#allocation8 + $0xb0] sm:$0xff]  ;;  %v467_v11 = vld [vmem:[#allocation8 + $0xa8] sm:$0xff]  ;;  %s1299_s0 = scalar_lea.vmem %s1815_s10, 128  ;;  %p1892_p5 = scmp.ne.s32.totalorder %s1880_s11, 0 }
  0x7f   : > { %492 = vmatprep.subr.mxu1 %v475_v3  ;;  %v466_v12 = vld [vmem:[#allocation8 + $0xa0] sm:$0xff]  ;;  %v465_v13 = vld [vmem:[#allocation8 + $0x98] sm:$0xff]  ;;  %v464_v14 = vld [vmem:[#allocation8 + $0x90] sm:$0xff]  ;;  %p1300_p0 = scmp.ne.s32.totalorder %s1815_s10, %s1299_s0  ;;  %s1387_s25 = smov [#allocation10]  }
  0x80   : > { %493 = vmatpush1.msra.mxu1 %v474_v4  ;;  %v463_v15 = vld [vmem:[#allocation8 + $0x88] sm:$0xff]  ;;  %v462_v16 = vld [vmem:[#allocation8 + $0x80] sm:$0xff]  ;;  %v461_v17 = vld [vmem:[#allocation8 + $0x78] sm:$0xff]  ;;  %s1303_s8 = sshll.u32 %s1387_s25, 4  ;;  %s1304_s8 = int_to_ptr.vmem [resolvable:$false] %s1303_s8 }
  0x81   : > { %494 = vmatprep.subr.mxu1 %v473_v5  ;;  %v460_v18 = vld [vmem:[#allocation8 + $0x70] sm:$0xff]  ;;  %v459_v19 = vld [vmem:[#allocation8 + $0x68] sm:$0xff]  ;;  %v368_v20 = vld [vmem:[#allocation7 + $0x78] sm:$0xff]  ;;  %p1301_p3 = pnand %p1300_p0, %p1892_p5  ;;  %s1305_s29 = scalar_lea.vmem %s1304_s8, 256 }
  0x82   : > { %495 = vmatpush1.msra.mxu1 %v472_v6  ;;  %v367_v21 = vld [vmem:[#allocation7 + $0x70] sm:$0xff]  ;;  %v458_v22 = vld [vmem:[#allocation8 + $0x60] sm:$0xff]  ;;  %1005 = vmatpush3.msra.mxu0 %v368_v20  ;;  %v457_v23 = vld [vmem:[#allocation8 + $0x58] sm:$0xff]  ;;  %p1306_p9 = scmp.lt.s32.totalorder %s1815_s10, %s1304_s8  ;;  %p1307_p13 = scmp.lt.s32.totalorder %s1305_s29, %s1299_s0 }
  0x83   : > { %496 = vmatprep.subr.mxu1 %v471_v7  ;;  %1006 = vmatprep.subr.mxu0 %v1385_v0  ;;  %v366_v24 = vld [vmem:[#allocation7 + $0x68] sm:$0xff]  ;;  %v456_v25 = vld [vmem:[#allocation8 + $0x50] sm:$0xff]  ;;  %v365_v27 = vld [vmem:[#allocation7 + $0x60] sm:$0xff]  ;;  %p1302_p11 = pneg %p1301_p3 }
  0x84   : > { %497 = vmatpush1.msra.mxu1 %v470_v8  ;;  %1007 = vmatpush3.msra.mxu0 %v367_v21  ;;  %v455_v26 = vld [vmem:[#allocation8 + $0x48] sm:$0xff]  ;;  %v454_v28 = vld [vmem:[#allocation8 + $0x40] sm:$0xff]  ;;  %v453_v29 = vld [vmem:[#allocation8 + $0x38] sm:$0xff]  ;;  %p1308_p1 = por %p1307_p13, %p1306_p9 }
  0x85   : > { %498 = vmatprep.subr.mxu1 %v469_v9  ;;  %1008 = vmatprep.subr.mxu0 %v1385_v0  ;;  %v364_v30 = vld [vmem:[#allocation7 + $0x58] sm:$0xff]  ;;  %v452_v31 = vld [vmem:[#allocation8 + $0x30] sm:$0xff]  ;;  %v451_v32 = vld [vmem:[#allocation8 + $0x28] sm:$0xff] }
  0x86   : > { %499 = vmatpush1.msra.mxu1 %v468_v10  ;;  %1009 = vmatpush3.msra.mxu0 %v366_v24  ;;  %v363_v33 = vld [vmem:[#allocation7 + $0x50] sm:$0xff]  ;;  %v450_v34 = vld [vmem:[#allocation8 + $0x20] sm:$0xff]  ;;  %v449_v35 = vld [vmem:[#allocation8 + $0x18] sm:$0xff]  ;;  %p1309_p4 = pnand %p1308_p1, %p1302_p11 }
  0x87   : > { %500 = vmatprep.subr.mxu1 %v467_v11  ;;  %1010 = vmatprep.subr.mxu0 %v1385_v0  ;;  %v362_v36 = vld [vmem:[#allocation7 + $0x48] sm:$0xff]  ;;  %v448_v37 = vld [vmem:[#allocation8 + $0x10] sm:$0xff]  ;;  %v361_v39 = vld [vmem:[#allocation7 + $0x40] sm:$0xff] }
  0x88   : > { %501 = vmatpush1.msra.mxu1 %v466_v12  ;;  %1011 = vmatpush3.msra.mxu0 %v365_v27  ;;  %v447_v38 = vld [vmem:[#allocation8 + $0x8] sm:$0xff]  ;;  %v446_v40 = vld [vmem:[#allocation8] sm:$0xff]  ;;  %v360_v42 = vld [vmem:[#allocation7 + $0x38] sm:$0xff] }
  0x89   : > { %502 = vmatprep.subr.mxu1 %v465_v13  ;;  %1012 = vmatprep.subr.mxu0 %v1385_v0  ;;  %v337_v41 = vld [vmem:[%s1613_s7] sm:$0xff]  ;;  %v359_v43 = vld [vmem:[#allocation7 + $0x30] sm:$0xff]  ;;  %v338_v44 = vld [vmem:[%s1613_s7 + $0x8] sm:$0xff] }
  0x8a   : > { %503 = vmatpush1.msra.mxu1 %v464_v14  ;;  %1013 = vmatpush3.msra.mxu0 %v364_v30  ;;  %v358_v45 = vld [vmem:[#allocation7 + $0x28] sm:$0xff]  ;;  %v357_v46 = vld [vmem:[#allocation7 + $0x20] sm:$0xff]  ;;  %v339_v47 = vld [vmem:[%s1613_s7 + $0x10] sm:$0xff] }
  0x8b   : > { %504 = vmatprep.subr.mxu1 %v463_v15  ;;  %1014 = vmatprep.subr.mxu0 %v1385_v0  ;;  %v356_v48 = vld [vmem:[#allocation7 + $0x18] sm:$0xff]  ;;  %v355_v49 = vld [vmem:[#allocation7 + $0x10] sm:$0xff]  ;;  %v354_v51 = vld [vmem:[#allocation7 + $0x8] sm:$0xff] }
  0x8c   : > { %505 = vmatpush1.msra.mxu1 %v462_v16  ;;  %1015 = vmatpush3.msra.mxu0 %v363_v33  ;;  %v340_v50 = vld [vmem:[%s1613_s7 + $0x18] sm:$0xff]  ;;  %v353_v52 = vld [vmem:[#allocation7] sm:$0xff]  ;;  %v342_v55 = vld [vmem:[%s1613_s7 + $0x28] sm:$0xff] }
  0x8d   : > { %506 = vmatprep.subr.mxu1 %v461_v17  ;;  %1016 = vmatprep.subr.mxu0 %v1385_v0  ;;  %v336_v53 = vld [vmem:[%s1605_s20] sm:$0xff]  ;;  %v341_v54 = vld [vmem:[%s1613_s7 + $0x20] sm:$0xff]  ;;  %v346_v59 = vld [vmem:[%s1613_s7 + $0x48] sm:$0xff]  ;;  %s806_s20 = scalar_lea.sflag [#allocation4], %s1599_s12 }
  0x8e   : > { %507 = vmatpush1.msra.mxu1 %v460_v18  ;;  %1017 = vmatpush3.msra.mxu0 %v362_v36  ;;  %v343_v56 = vld [vmem:[%s1613_s7 + $0x30] sm:$0xff]  ;;  %v344_v57 = vld [vmem:[%s1613_s7 + $0x38] sm:$0xff]  ;;  %v345_v58 = vld [vmem:[%s1613_s7 + $0x40] sm:$0xff] }
  0x8f   : > { %508 = vmatprep.subr.mxu1 %v459_v19  ;;  %1018 = vmatprep.subr.mxu0 %v1385_v0  ;;  %v347_v60 = vld [vmem:[%s1613_s7 + $0x50] sm:$0xff]  ;;  %v348_v61 = vld [vmem:[%s1613_s7 + $0x58] sm:$0xff]  ;;  %v349_v62 = vld [vmem:[%s1613_s7 + $0x60] sm:$0xff] }
  0x90   : > { %509 = vmatpush1.msra.mxu1 %v458_v22  ;;  %1019 = vmatpush3.msra.mxu0 %v361_v39  ;;  %v350_v63 = vld [vmem:[%s1613_s7 + $0x68] sm:$0xff]  ;;  %v351_v1 = vld [vmem:[%s1613_s7 + $0x70] sm:$0xff]  ;;  %v352_v2 = vld [vmem:[%s1613_s7 + $0x78] sm:$0xff] }
  0x91   : > { %510 = vmatprep.subr.mxu1 %v457_v23  ;;  %1020 = vmatprep.subr.mxu0 %v1385_v0  ;;  %v478_v36 = vld [vmem:[%s1866_s5] sm:$0x3] }
  0x92   : > { %511 = vmatpush1.msra.mxu1 %v456_v25  ;;  %1021 = vmatpush3.msra.mxu0 %v360_v42 }
  0x93   : > { %512 = vmatprep.subr.mxu1 %v455_v26  ;;  %1022 = vmatprep.subr.mxu0 %v1385_v0 }
  0x94   : > { %513 = vmatpush1.msra.mxu1 %v454_v28  ;;  %1023 = vmatpush3.msra.mxu0 %v359_v43 }
  0x95   : > { %514 = vmatprep.subr.mxu1 %v453_v29  ;;  %1024 = vmatprep.subr.mxu0 %v1385_v0  ;;  %v480_v29 = vlaneseq }
  0x96   : > { %515 = vmatpush1.msra.mxu1 %v452_v31  ;;  %1025 = vmatpush3.msra.mxu0 %v358_v45 }
  0x97   : > { %516 = vmatprep.subr.mxu1 %v451_v32  ;;  %1026 = vmatprep.subr.mxu0 %v1385_v0  ;;  %v481_v32 = vshrl.u32 %v480_v29, 7 }
  0x98   : > { %517 = vmatpush1.msra.mxu1 %v450_v34  ;;  %1027 = vmatpush3.msra.mxu0 %v357_v46 }
  0x99   : > { %518 = vmatprep.subr.mxu1 %v449_v35  ;;  %1028 = vmatprep.subr.mxu0 %v1385_v0  ;;  %v482_v35 = vsub.s32 0, %v481_v32 }
  0x9a   : > { %519 = vmatpush1.msra.mxu1 %v448_v37  ;;  %1029 = vmatpush3.msra.mxu0 %v356_v48 }
  0x9b   : > { %520 = vmatprep.subr.mxu1 %v447_v38  ;;  %1030 = vmatprep.subr.mxu0 %v1385_v0  ;;  %v486_v38 = vsub.s32 1, %v481_v32 }
  0x9c   : > { %521 = vmatpush1.msra.mxu1 %v446_v40  ;;  %1031 = vmatpush3.msra.mxu0 %v355_v49  ;;  %v1724_v40 = vrot.slane %v478_v36, %v482_v35 }
  0x9d   : > { %555 = vmatmul.mubr.f32.vlgmr.msra.gmra.mxu1 %v337_v41  ;;  %1074 = vmatprep.subr.mxu1 %v1385_v0  ;;  %v1726_v42 = vrot.slane %v478_v36, %v486_v38 }
  0x9e   : > { %560 = vmatprep.mubr.f32.mxu1 %v1385_v0  ;;  %1032 = vmatprep.subr.mxu0 %v1385_v0 }
  0x9f   : > { %1033 = vmatpush3.msra.mxu0 %v354_v51 }
  0xa0   : > { %1034 = vmatprep.subr.mxu0 %v1385_v0 }
  0xa1   : > { %561 = vmatmul.mubr.f32.gmra.mxu1 %v338_v44  ;;  %1035 = vmatpush3.msra.mxu0 %v353_v52 }
  0xa2   : > { %566 = vmatprep.mubr.f32.mxu1 %v1385_v0  ;;  %1037 = vmatmul.mubr.f32.vlgmr.msra.gmra.mxu0 %v336_v53 }
  0xa3   : > { %1039 = vmatprep.subr.mxu0 %v1385_v0  ;;  %1071 = vmatprep.mubr.msk.f32.mxu0 %vm1386_vm0, %v1385_v0 }
  0xa5   : > { %567 = vmatmul.mubr.f32.gmra.mxu1 %v339_v47 }
  0xa6   : > { %572 = vmatprep.mubr.f32.mxu1 %v1385_v0 }
  0xa9   : > { %573 = vmatmul.mubr.f32.gmra.mxu1 %v340_v50 }
  0xaa   : > { %578 = vmatprep.mubr.f32.mxu1 %v1385_v0 }
  0xad   : > { %579 = vmatmul.mubr.f32.gmra.mxu1 %v341_v54 }
  0xae   : > { %584 = vmatprep.mubr.f32.mxu1 %v1385_v0 }
  0xb1   : > { %585 = vmatmul.mubr.f32.gmra.mxu1 %v342_v55 }
  0xb2   : > { %590 = vmatprep.mubr.f32.mxu1 %v1385_v0 }
  0xb5   : > { %591 = vmatmul.mubr.f32.gmra.mxu1 %v343_v56 }
  0xb6   : > { %596 = vmatprep.mubr.f32.mxu1 %v1385_v0 }
  0xb9   : > { %597 = vmatmul.mubr.f32.gmra.mxu1 %v344_v57 }
  0xba   : > { %602 = vmatprep.mubr.f32.mxu1 %v1385_v0 }
  0xbd   : > { %603 = vmatmul.mubr.f32.gmra.mxu1 %v345_v58 }
  0xbe   : > { %608 = vmatprep.mubr.f32.mxu1 %v1385_v0 }
  0xc1   : > { %609 = vmatmul.mubr.f32.gmra.mxu1 %v346_v59 }
  0xc2   : > { %614 = vmatprep.mubr.f32.mxu1 %v1385_v0 }
  0xc5   : > { %615 = vmatmul.mubr.f32.gmra.mxu1 %v347_v60 }
  0xc6   : > { %620 = vmatprep.mubr.f32.mxu1 %v1385_v0 }
  0xc9   : > { %621 = vmatmul.mubr.f32.gmra.mxu1 %v348_v61 }
  0xca   : > { %626 = vmatprep.mubr.f32.mxu1 %v1385_v0 }
  0xcd   : > { %627 = vmatmul.mubr.f32.gmra.mxu1 %v349_v62 }
  0xce   : > { %632 = vmatprep.mubr.f32.mxu1 %v1385_v0 }
  0xd1   : > { %633 = vmatmul.mubr.f32.gmra.mxu1 %v350_v63 }
  0xd2   : > { %638 = vmatprep.mubr.f32.mxu1 %v1385_v0 }
  0xd5   : > { %639 = vmatmul.mubr.f32.gmra.mxu1 %v351_v1 }
  0xd6   : > { %644 = vmatprep.mubr.f32.mxu1 %v1385_v0 }
  0xd9   : > { %645 = vmatmul.mubr.f32.gmra.mxu1 %v352_v2 }
  0xda   : > { %1106 = vmatprep.mubr.msk.f32.mxu1 %vm1386_vm0, %v1385_v0 }
 0x15d   : > { %v1684_v3 = vpop.f32.mrf.mxu1 }
 0x15f   : > { %v1686_v4 = vpop.f32.mrf.mxu1 }
 0x161   : > { %v1688_v5 = vpop.f32.mrf.mxu1 }
 0x162   : > { %v1700_v11 = vpop.f32.mrf.mxu0 }
 0x163   : > { %v1690_v6 = vpop.f32.mrf.mxu1 }
 0x164   : > { %v1038_v13 = vpop.f32.mrf.mxu0 }
 0x165   : > { %v1692_v7 = vpop.f32.mrf.mxu1  ;;  %v565_v13 = vadd.f32 %v1690_v6, %v1726_v42 }
 0x167   : > { %v1694_v8 = vpop.f32.mrf.mxu1 }
 0x168   : > { %v571_v1 = vadd.f32 %v1694_v8, %v1726_v42 }
 0x169   : > { %v1696_v9 = vpop.f32.mrf.mxu1 }
 0x16b   : > { %v1698_v10 = vpop.f32.mrf.mxu1 }
 0x16c   : > { %v577_v63 = vadd.f32 %v1698_v10, %v1726_v42  ;;  %v559_v10 = vadd.f32 %v1686_v4, %v1726_v42 }
 0x16d   : > { %v1702_v12 = vpop.f32.mrf.mxu1 }
 0x16e   : > { %v581_v4 = vadd.f32 %v1702_v12, %v1724_v40  ;;  %v947_v12 = vld [vmem:[%s1864_s3] ss:$0 sm:$0xff] }
 0x16f   : > { %v1704_v14 = vpop.f32.mrf.mxu1 }
 0x170   : > { %v583_v61 = vadd.f32 %v1704_v14, %v1726_v42 }
 0x171   : > { %v1706_v15 = vpop.f32.mrf.mxu1 }
 0x172   : > { %v587_v14 = vadd.f32 %v1706_v15, %v1724_v40  ;;  %v563_v15 = vadd.f32 %v1688_v5, %v1724_v40 }
 0x173   : > { %v1708_v16 = vpop.f32.mrf.mxu1 }
 0x174   : > { %v589_v60 = vadd.f32 %v1708_v16, %v1726_v42  ;;  %v575_v16 = vadd.f32 %v1696_v9, %v1724_v40  ;;  %v557_v9 = vadd.f32 %v1684_v3, %v1724_v40 }
 0x175   : > { %v1710_v17 = vpop.f32.mrf.mxu1 }
 0x176   : > { %v593_v6 = vadd.f32 %v1710_v17, %v1724_v40  ;;  %v569_v17 = vadd.f32 %v1692_v7, %v1724_v40  ;;  %v722_v7 = vand.u32 127, %v480_v29 }
 0x177   : > { %v1712_v18 = vpop.f32.mrf.mxu1 }
 0x178   : > { %v595_v58 = vadd.f32 %v1712_v18, %v1726_v42  ;;  %v443_v18 = vadd.f32 %v947_v12, %v1700_v11  ;;  %vm723_vm1 = vcmp.lt.s32.totalorder %v722_v7, 8 }
 0x179   : > { %v1714_v19 = vpop.f32.mrf.mxu1 }
 0x17a   : > { %v599_v8 = vadd.f32 %v1714_v19, %v1724_v40 }
 0x17b   : > { %v600_v20 = vpop.f32.mrf.mxu1 }
 0x17c   : > { %v601_v57 = vadd.f32 %v600_v20, %v1726_v42 }
 0x17d   : > { %v1716_v21 = vpop.f32.mrf.mxu1 }
 0x17e   : > { %v605_v2 = vadd.f32 %v1716_v21, %v1724_v40 }
 0x17f   : > { %v606_v22 = vpop.f32.mrf.mxu1 }
 0x180   : > { %v607_v55 = vadd.f32 %v606_v22, %v1726_v42 }
 0x181   : > { %v1718_v23 = vpop.f32.mrf.mxu1 }
 0x182   : > { %v611_v62 = vadd.f32 %v1718_v23, %v1724_v40 }
 0x183   : > { %v612_v24 = vpop.f32.mrf.mxu1 }
 0x184   : > { %v613_v54 = vadd.f32 %v612_v24, %v1726_v42 }
 0x185   : > { %v616_v25 = vpop.f32.mrf.mxu1 }
 0x186   : > { %v617_v59 = vadd.f32 %v616_v25, %v1724_v40 }
 0x187   : > { %v618_v26 = vpop.f32.mrf.mxu1 }
 0x188   : > { %v619_v52 = vadd.f32 %v618_v26, %v1726_v42 }
 0x189   : > { %v622_v27 = vpop.f32.mrf.mxu1 }
 0x18a   : > { %v623_v56 = vadd.f32 %v622_v27, %v1724_v40 }
 0x18b   : > { %v624_v28 = vpop.f32.mrf.mxu1 }
 0x18c   : > { %v625_v51 = vadd.f32 %v624_v28, %v1726_v42 }
 0x18d   : > { %v628_v30 = vpop.f32.mrf.mxu1 }
 0x18e   : > { %v629_v53 = vadd.f32 %v628_v30, %v1724_v40 }
 0x18f   : > { %v630_v31 = vpop.f32.mrf.mxu1 }
 0x190   : > { %v631_v49 = vadd.f32 %v630_v31, %v1726_v42 }
 0x191   : > { %v634_v33 = vpop.f32.mrf.mxu1 }
 0x192   : > { %v635_v50 = vadd.f32 %v634_v33, %v1724_v40 }
 0x193   : > { %v636_v34 = vpop.f32.mrf.mxu1 }
 0x194   : > { %v637_v48 = vadd.f32 %v636_v34, %v1726_v42 }
 0x195   : > { %v640_v37 = vpop.f32.mrf.mxu1 }
 0x196   : > { %v641_v46 = vadd.f32 %v640_v37, %v1724_v40 }
 0x197   : > { %v642_v39 = vpop.f32.mrf.mxu1 }
 0x198   : > { %v643_v47 = vadd.f32 %v642_v39, %v1726_v42 }
 0x199   : > { %v646_v41 = vpop.f32.mrf.mxu1 }
 0x19a   : > { %v647_v43 = vadd.f32 %v646_v41, %v1724_v40 }
 0x19b   : > { %v648_v44 = vpop.f32.mrf.mxu1 }
 0x19c   : > { %v649_v45 = vadd.f32 %v648_v44, %v1726_v42  ;;  %1040 = vmatpush3.xpose.msra.mxu0 %v647_v43 }
 0x19d   : > { %1041 = vmatprep.subr.mxu0 %v1385_v0 }
 0x19e   : > { %1075 = vmatpush3.msra.mxu1 %v649_v45 }
 0x19f   : > { %1076 = vmatprep.subr.mxu1 %v1385_v0 }
 0x1a0   : > { %1042 = vmatpush3.xpose.msra.mxu0 %v641_v46  ;;  %1077 = vmatpush3.msra.mxu1 %v643_v47 }
 0x1a1   : > { %1078 = vmatprep.subr.mxu1 %v1385_v0  ;;  %1043 = vmatprep.subr.mxu0 %v1385_v0 }
 0x1a2   : > { %1079 = vmatpush3.msra.mxu1 %v637_v48 }
 0x1a3   : > { %1080 = vmatprep.subr.mxu1 %v1385_v0 }
 0x1a4   : > { %1044 = vmatpush3.xpose.msra.mxu0 %v635_v50  ;;  %1081 = vmatpush3.msra.mxu1 %v631_v49 }
 0x1a5   : > { %1082 = vmatprep.subr.mxu1 %v1385_v0  ;;  %1045 = vmatprep.subr.mxu0 %v1385_v0 }
 0x1a6   : > { %1083 = vmatpush3.msra.mxu1 %v625_v51 }
 0x1a7   : > { %1084 = vmatprep.subr.mxu1 %v1385_v0 }
 0x1a8   : > { %1046 = vmatpush3.xpose.msra.mxu0 %v629_v53  ;;  %1085 = vmatpush3.msra.mxu1 %v619_v52 }
 0x1a9   : > { %1086 = vmatprep.subr.mxu1 %v1385_v0  ;;  %1047 = vmatprep.subr.mxu0 %v1385_v0 }
 0x1aa   : > { %1087 = vmatpush3.msra.mxu1 %v613_v54 }
 0x1ab   : > { %1088 = vmatprep.subr.mxu1 %v1385_v0 }
 0x1ac   : > { %1048 = vmatpush3.xpose.msra.mxu0 %v623_v56  ;;  %1089 = vmatpush3.msra.mxu1 %v607_v55 }
 0x1ad   : > { %1090 = vmatprep.subr.mxu1 %v1385_v0  ;;  %1049 = vmatprep.subr.mxu0 %v1385_v0 }
 0x1ae   : > { %1091 = vmatpush3.msra.mxu1 %v601_v57 }
 0x1af   : > { %1092 = vmatprep.subr.mxu1 %v1385_v0 }
 0x1b0   : > { %1050 = vmatpush3.xpose.msra.mxu0 %v617_v59  ;;  %1093 = vmatpush3.msra.mxu1 %v595_v58 }
 0x1b1   : > { %1094 = vmatprep.subr.mxu1 %v1385_v0  ;;  %1051 = vmatprep.subr.mxu0 %v1385_v0 }
 0x1b2   : > { %1095 = vmatpush3.msra.mxu1 %v589_v60 }
 0x1b3   : > { %1096 = vmatprep.subr.mxu1 %v1385_v0 }
 0x1b4   : > { %1052 = vmatpush3.xpose.msra.mxu0 %v611_v62  ;;  %1097 = vmatpush3.msra.mxu1 %v583_v61 }
 0x1b5   : > { %1098 = vmatprep.subr.mxu1 %v1385_v0  ;;  %1053 = vmatprep.subr.mxu0 %v1385_v0 }
 0x1b6   : > { %1099 = vmatpush3.msra.mxu1 %v577_v63 }
 0x1b7   : > { %1100 = vmatprep.subr.mxu1 %v1385_v0 }
 0x1b8   : > { %1054 = vmatpush3.xpose.msra.mxu0 %v605_v2  ;;  %1101 = vmatpush3.msra.mxu1 %v571_v1 }
 0x1b9   : > { %1102 = vmatprep.subr.mxu1 %v1385_v0  ;;  %1055 = vmatprep.subr.mxu0 %v1385_v0 }
 0x1ba   : > { %1103 = vmatpush3.msra.mxu1 %v565_v13 }
 0x1bb   : > { %1104 = vmatprep.subr.mxu1 %v1385_v0 }
 0x1bc   : > { %1056 = vmatpush3.xpose.msra.mxu0 %v599_v8  ;;  %1105 = vmatpush3.msra.mxu1 %v559_v10 }
 0x1bd   : > { %1057 = vmatprep.subr.mxu0 %v1385_v0 }
 0x1c0   : > { %1058 = vmatpush3.xpose.msra.mxu0 %v593_v6 }
 0x1c1   : > { %1059 = vmatprep.subr.mxu0 %v1385_v0 }
 0x1c4   : > { %1060 = vmatpush3.xpose.msra.mxu0 %v587_v14 }
 0x1c5   : > { %1061 = vmatprep.subr.mxu0 %v1385_v0 }
 0x1c8   : > { %1062 = vmatpush3.xpose.msra.mxu0 %v581_v4 }
 0x1c9   : > { %1063 = vmatprep.subr.mxu0 %v1385_v0 }
 0x1cc   : > { %1064 = vmatpush3.xpose.msra.mxu0 %v575_v16 }
 0x1cd   : > { %1065 = vmatprep.subr.mxu0 %v1385_v0 }
 0x1d0   : > { %1066 = vmatpush3.xpose.msra.mxu0 %v569_v17 }
 0x1d1   : > { %1067 = vmatprep.subr.mxu0 %v1385_v0 }
 0x1d4   : > { %1068 = vmatpush3.xpose.msra.mxu0 %v563_v15 }
 0x1d5   : > { %1069 = vmatprep.subr.mxu0 %v1385_v0 }
 0x1d8   : > { %1070 = vmatpush3.xpose.msra.mxu0 %v557_v9 }
 0x1db   : > { %1072 = vmatmul.mubr.f32.vlgmr.msra.gmra.mxu0 %v443_v18 }
 0x29b   : > { %v717_v19 = vpop.f32.mrf.mxu0 }
 0x29c   : > { %v724_v5 = vsel %vm723_vm1, %v717_v19, -1e+30 }
 0x29d   : > { %725 = vmax.xlane.f32.xlu0 %v724_v5  ;;  %v1073_v20 = vpop.f32.mrf.mxu0 }
 0x326   : > { %v726_v21 = vpop.xlane.xlu0 %725 }
 0x327   : > { %v727_v22 = vsub.f32 %v724_v5, %v726_v21 }
 0x329   : > { %v728_v23 = vmul.f32 1.442695, %v727_v22 }
 0x32b   : > { %1187 = vpow2.f32 %v728_v23 }
 0x338   : > { %v1188_v0 = vpop.eup %1187 }
 0x339   : > { %730 = vadd.xlane.f32.xlu0 %v1188_v0 }
 0x3c2   : > { %v731_v3 = vpop.xlane.xlu0 %730 }
 0x3c3   : > { %1189 = vrcp.f32 %v731_v3 }
 0x3d0   : > { %v1190_v11 = vpop.eup %1189 }
 0x3d1   : > { %v733_v24 = vmul.f32 %v1190_v11, %v1188_v0 }
 0x3d3   : > { %1107 = vmatmul.mubr.f32.vlgmr.msra.gmra.mxu1 %v733_v24 }
 0x493   : > { %v800_v25 = vpop.f32.mrf.mxu1 }
 0x494   : > { %804 = vst [vmem:[%s335_s18] sm:$0xff] %v800_v25 }
 0x495   : > { %v1108_v26 = vpop.f32.mrf.mxu1 }
 0x496   : > { %1312 = shalt.err (!%p1309_p4)
}
 0x497   : > { %s1313_s16 = scalar_lea.hbm %s1820_s17, 128  ;;  %s1317_s27 = scalar_lea.hbm %s1867_s6, 256 }
 0x498   : > { %p1314_p10 = scmp.ne.s32.totalorder %s1820_s17, %s1313_s16  ;;  %p1318_p2 = scmp.lt.s32.totalorder %s1820_s17, %s1867_s6 }
 0x499   : > { %p1319_p6 = scmp.lt.s32.totalorder %s1317_s27, %s1313_s16 }
 0x49a   : > { %p1315_p7 = pnand %p1314_p10, %p1892_p5 }
 0x49b   : > { %p1320_p12 = por %p1319_p6, %p1318_p2 }
 0x49c   : > { %p1316_p8 = pneg %p1315_p7 }
 0x49e   : > { %p1321_p0 = pnand %p1320_p12, %p1316_p8 }
 0x4a0   : > { %1324 = shalt.err (!%p1321_p0)
}
 0x4a1   : > { %1121 = dma.vmem_to_hbm [thread:$0]  (%p1892_p5), %s1815_s10, 128, %s1820_s17, %s806_s20  }
 0x4a2 PF: > { %s831_s15 = sand.u32 1, %s1363_s21   ;;  %p1893_p3 = scmp.ne.s32.totalorder %s1876_s28, 0 }
 0x4a3   : > { %p1894_p11 = scmp.ge.s32.totalorder %s1375_s24, 2  ;;  %s832_s18 = scalar_lea.sflag [#allocation4], %s831_s15 }
 0x4a5   : > { %p1138_p9 = pnand %p1894_p11, %p1893_p3 }
 0x4a7   : > { %p1139_p13 = pneg %p1138_p9 }
 0x4a9   : > { %1358 = dma.done.wait (%p1139_p13), %s832_s18, 128  }
 0x4aa   : > { %1360 = vsyncadd (%p1139_p13), %s832_s18, 4294967168  ;;  %p23_p1 = scmp.ge.s32.totalorder %s1498_s26, 4   ;;  %s1895_s21 = smov %s1367_s22 }
 0x4ab   : > { %s1896_s22 = smov %s1371_s23  ;;  %s1897_s23 = smov %s1507_s9 }
 0x4ac   : > { %s1898_s24 = smov %s1498_s26  ;;  %25 = sbr.rel (!%p23_p1) target bundleno = 11 (0xb), region = 110 }
 0x4b1   :  { %837 = vsyncpa [#allocation3], 1 }
 0x4b2   :  { %839 = vsyncpa [#allocation3 + $0x1], 1 }
 0x4b3   :  { %840 = vsyncpa [#allocation6], 1 }
 0x4b4   :  { %842 = vsyncpa [#allocation6 + $0x1], 1 }
 0x4b5   :  { %843 = vsyncpa [#allocation9], 1 }
 0x4b6   :  { %844 = vsyncpa [#allocation4], 1 }
 0x4b7   :  { %846 = vsyncpa [#allocation4 + $0x1], 1 }

</bundles_post_ra>
